<compile_context>
chip_gen: v7x
topology: tpu7x:2x2x1
jax: 0.10.0
libtpu: 0.0.40
codegen_flags: <defaults>
</compile_context>

<pallas_src>
import functools
import math

import jax
import jax.numpy as jnp
from jax.experimental import pallas as pl
from jax.experimental.pallas import tpu as pltpu


# v7x has only 64 MiB VMEM per TensorCore; keep the request well under that
# and leave headroom for double-buffered weight blocks on all generations.
VMEM_LIMIT_BYTES = 48 * 1024 * 1024

# MXU input dtype.  Flip to jnp.bfloat16 on v6e/v7x for ~2x matmul throughput
# and half the weight HBM traffic; accumulation stays f32 via
# preferred_element_type.  Kept f32 here so the numeric check vs the f32
# reference is tight.  All VPU / elementwise math stays f32 (v5e has no bf16
# VPU/EUP).
MATMUL_DTYPE = jnp.float32


# ----------------------------- in-kernel math ------------------------------

def _layernorm(x, w, b, eps=1e-5):
    mu = jnp.mean(x, axis=-1, keepdims=True)
    var = jnp.mean((x - mu) ** 2, axis=-1, keepdims=True)
    w = w.reshape((1,) * (x.ndim - 1) + (-1,))
    b = b.reshape((1,) * (x.ndim - 1) + (-1,))
    return (x - mu) * jax.lax.rsqrt(var + eps) * w + b


def _silu(x):
    # sigmoid routes through the EUP slot (cheap next to the VPU-bound scan)
    return x * jax.nn.sigmoid(x)


def _softplus(x):
    # numerically stable log(1 + exp(x)) with a single exp
    return jnp.maximum(x, 0.0) + jnp.log1p(jnp.exp(-jnp.abs(x)))


# --------------------------- fused per-layer kernel --------------------------

def _fused_layers_kernel(x_ref, ln_w_ref, ln_b_ref, in_w_ref, in_b_ref,
                         conv_w_ref, conv_b_ref, xp_w_ref, xp_b_ref,
                         dt_w_ref, dt_b_ref, a_ref, out_w_ref, out_b_ref,
                         mln_w_ref, mln_b_ref,
                         o_ref,
                         conv_buf, dA_buf, dBX_buf, y_buf,
                         *, L, D, E, N, R, K, CL):
    """grid = (B, n_layers); one (batch-row, layer) step per invocation."""
    layer = pl.program_id(1)

    # Layer 0: seed the VMEM-resident activation block from the embedding.
    @pl.when(layer == 0)
    def _():
        o_ref[...] = x_ref[...]

    x = o_ref[0]                                          # (L, D) activation

    # ---- per-layer LayerNorm -------------------------------------------------
    h = _layernorm(x, ln_w_ref[0], ln_b_ref[0])

    # ---- in_proj: (L, D) @ (D, 2E) on the MXU ---------------------------------
    xz = jnp.dot(h.astype(MATMUL_DTYPE), in_w_ref[0].astype(MATMUL_DTYPE),
                 preferred_element_type=jnp.float32) + in_b_ref[0]
    xc = xz[:, :E]                                        # (L, E)
    z = xz[:, E:]                                         # (L, E)

    # ---- depthwise conv1d over L (symmetric zero pad, groups=E) --------------
    # padded scratch instead of concat: one store of xc + zeroed edge rows.
    pad = (K - 1) // 2
    if pad > 0:
        conv_buf[pl.ds(0, pad)] = jnp.zeros((pad, E), jnp.float32)
        conv_buf[pl.ds(pad + L, K - 1 - pad)] = jnp.zeros((K - 1 - pad, E),
                                                          jnp.float32)
    conv_buf[pl.ds(pad, L)] = xc
    cw = conv_w_ref[0]                                    # (K, E)
    acc = jnp.broadcast_to(conv_b_ref[0], (L, E))
    for k in range(K):
        acc = acc + cw[k:k + 1, :] * conv_buf[pl.ds(k, L)]
    xs = _silu(acc)                                       # (L, E)

    # ---- x_proj + dt_proj ------------------------------------------------------
    proj = jnp.dot(xs.astype(MATMUL_DTYPE), xp_w_ref[0].astype(MATMUL_DTYPE),
                   preferred_element_type=jnp.float32) + xp_b_ref[0]
    dt_low = proj[:, :R]                                  # (L, R)
    Bm = proj[:, R:R + N]                                 # (L, N)
    Cm = proj[:, R + N:R + 2 * N]                         # (L, N)

    dt = jnp.dot(dt_low.astype(MATMUL_DTYPE), dt_w_ref[0].astype(MATMUL_DTYPE),
                 preferred_element_type=jnp.float32) + dt_b_ref[0]
    dt = _softplus(dt)                                    # (L, E)

    A = a_ref[0]                                          # (N, E) = (-exp(A_log)).T
    dtxs = dt * xs                                        # (L, E)

    # ---- selective scan, lane-dense (·, N, E) layout, chunked over L ----------
    # Exact doubling scan within each power-of-two chunk (in-place on VMEM
    # scratch), sequential (N, E) state carry between chunks.
    carry = jnp.zeros((N, E), jnp.float32)
    n_scan = CL.bit_length() - 1                          # log2(CL)
    for c0 in range(0, L, CL):
        dt_c = dt[c0:c0 + CL]                             # (CL, E)
        dx_c = dtxs[c0:c0 + CL]                           # (CL, E)
        Bm_c = Bm[c0:c0 + CL]                             # (CL, N)
        Cm_c = Cm[c0:c0 + CL]                             # (CL, N)

        dA_buf[...] = jnp.exp(dt_c[:, None, :] * A[None, :, :])   # (CL, N, E)
        dBX_buf[...] = dx_c[:, None, :] * Bm_c[:, :, None]        # (CL, N, E)

        # in-place doubling prefix scan along the (untiled) leading axis
        for i in range(n_scan):
            s = 1 << i
            a_tail = dA_buf[pl.ds(s, CL - s)]
            a_head = dA_buf[pl.ds(0, CL - s)]
            bx_head = dBX_buf[pl.ds(0, CL - s)]
            bx_tail = dBX_buf[pl.ds(s, CL - s)]
            dBX_buf[pl.ds(s, CL - s)] = a_tail * bx_head + bx_tail
            dA_buf[pl.ds(s, CL - s)] = a_tail * a_head

        hst = dA_buf[...] * carry[None, :, :] + dBX_buf[...]      # (CL, N, E)
        carry = hst[CL - 1]                                       # (N, E)
        # sublane reduce over N (E stays on lanes)
        y_buf[pl.ds(c0, CL)] = jnp.sum(hst * Cm_c[:, :, None], axis=1)

    y = y_buf[...]                                        # (L, E)

    # ---- gate + out_proj + outer residual + shared model LayerNorm ------------
    gated = y * _silu(z)
    out = jnp.dot(gated.astype(MATMUL_DTYPE), out_w_ref[0].astype(MATMUL_DTYPE),
                  preferred_element_type=jnp.float32) + out_b_ref[0]
    o_ref[0] = _layernorm(out + x, mln_w_ref[...], mln_b_ref[...])


def fused_mamba_layers(x, stacked, mln_w, mln_b, *, kernel_size, d_rank,
                       d_hidden, scan_chunk=256):
    (ln_w, ln_b, in_w, in_b, conv_w, conv_b, xp_w, xp_b,
     dt_w, dt_b, a_log, out_w, out_b) = stacked
    B_, L, D = x.shape
    n_layers = ln_w.shape[0]
    E = in_w.shape[2] // 2
    N = d_hidden
    R = d_rank
    K = kernel_size

    assert K % 2 == 1, "odd kernel_size keeps conv output length == L"
    assert L & (L - 1) == 0, "doubling scan (as in the reference) needs 2^k L"
    CL = min(scan_chunk, L)
    assert CL & (CL - 1) == 0 and L % CL == 0

    # A = -exp(A_log), transposed so E sits on the lane axis: (n_layers, N, E)
    a_neg_t = jnp.transpose(-jnp.exp(a_log), (0, 2, 1))

    kern = functools.partial(_fused_layers_kernel,
                             L=L, D=D, E=E, N=N, R=R, K=K, CL=CL)

    xmap = lambda b, l: (b, 0, 0)       # per-batch block, constant over layers
    wmap = lambda b, l: (l, 0, 0)       # per-layer weight block
    cmap = lambda b, l: (0, 0)          # shared (model LN) params

    grid_spec = pltpu.PrefetchScalarGridSpec(
        num_scalar_prefetch=0,
        grid=(B_, n_layers),
        in_specs=[
            pl.BlockSpec((1, L, D), xmap),              # x (embedding)
            pl.BlockSpec((1, 1, D), wmap),              # ln_w
            pl.BlockSpec((1, 1, D), wmap),              # ln_b
            pl.BlockSpec((1, D, 2 * E), wmap),          # in_w
            pl.BlockSpec((1, 1, 2 * E), wmap),          # in_b
            pl.BlockSpec((1, K, E), wmap),              # conv_w
            pl.BlockSpec((1, 1, E), wmap),              # conv_b
            pl.BlockSpec((1, E, R + 2 * N), wmap),      # xp_w
            pl.BlockSpec((1, 1, R + 2 * N), wmap),      # xp_b
            pl.BlockSpec((1, R, E), wmap),              # dt_w
            pl.BlockSpec((1, 1, E), wmap),              # dt_b
            pl.BlockSpec((1, N, E), wmap),              # -exp(A_log).T
            pl.BlockSpec((1, E, D), wmap),              # out_w
            pl.BlockSpec((1, 1, D), wmap),              # out_b
            pl.BlockSpec((1, D), cmap),                 # model ln_w (shared)
            pl.BlockSpec((1, D), cmap),                 # model ln_b (shared)
        ],
        out_specs=pl.BlockSpec((1, L, D), xmap),        # VMEM-resident across layers
        scratch_shapes=[
            pltpu.VMEM((L + K - 1, E), jnp.float32),    # conv pad buffer
            pltpu.VMEM((CL, N, E), jnp.float32),        # dA scan buffer
            pltpu.VMEM((CL, N, E), jnp.float32),        # dBX scan buffer
            pltpu.VMEM((L, E), jnp.float32),            # y buffer
        ],
    )

    return pl.pallas_call(
        kern,
        out_shape=jax.ShapeDtypeStruct((B_, L, D), x.dtype),
        grid_spec=grid_spec,
        compiler_params=pltpu.CompilerParams(
            dimension_semantics=("parallel", "arbitrary"),
            vmem_limit_bytes=VMEM_LIMIT_BYTES),
    )(x, ln_w, ln_b, in_w, in_b, conv_w, conv_b, xp_w, xp_b,
      dt_w, dt_b, a_neg_t, out_w, out_b, mln_w, mln_b)


# --------------------------------- LM head -----------------------------------

def _head_kernel(x_ref, w_ref, o_ref):
    o_ref[...] = jnp.dot(x_ref[...].astype(MATMUL_DTYPE),
                         w_ref[...].astype(MATMUL_DTYPE),
                         preferred_element_type=jnp.float32)


def _pick_vocab_tile(v):
    for cand in (2048, 1024, 512, 256, 128):
        if v % cand == 0:
            return cand
    return v


def lm_head(x_last, head_w_t):
    Bn, D = x_last.shape
    V = head_w_t.shape[1]
    tile_v = _pick_vocab_tile(V)
    return pl.pallas_call(
        _head_kernel,
        out_shape=jax.ShapeDtypeStruct((Bn, V), jnp.float32),
        grid=(V // tile_v,),
        in_specs=[pl.BlockSpec((Bn, D), lambda j: (0, 0)),       # x stays resident
                  pl.BlockSpec((D, tile_v), lambda j: (0, j))],  # weight streams
        out_specs=pl.BlockSpec((Bn, tile_v), lambda j: (0, j)),
        compiler_params=pltpu.CompilerParams(
            dimension_semantics=("parallel",),
            vmem_limit_bytes=VMEM_LIMIT_BYTES),
    )(x_last, head_w_t)


# ------------------------------- full forward --------------------------------

def mamba_llm_forward(tokens, emb, stacked, mln_w, mln_b, head_w_t, *,
                      kernel_size, d_rank, d_hidden, scan_chunk=256):
    # token embedding gather is glue (plain JAX)
    x = jnp.take(emb, tokens, axis=0)                     # (B, L, D)
    x = fused_mamba_layers(x, stacked, mln_w, mln_b,
                           kernel_size=kernel_size, d_rank=d_rank,
                           d_hidden=d_hidden, scan_chunk=scan_chunk)
    return lm_head(x[:, -1], head_w_t)                    # (B, vocab)


# ------------------------- plain-JAX reference (check) ------------------------

def ref_forward(tokens, emb, stacked, mln_w, mln_b, head_w_t, *,
                kernel_size, d_rank, d_hidden):
    (ln_w, ln_b, in_w, in_b, conv_w, conv_b, xp_w, xp_b,
     dt_w, dt_b, a_log, out_w, out_b) = stacked
    hi = jax.lax.Precision.HIGHEST
    K, R, N = kernel_size, d_rank, d_hidden
    pad = (K - 1) // 2
    x = jnp.take(emb, tokens, axis=0)
    B_, L, D = x.shape
    E = a_log.shape[1]
    for li in range(ln_w.shape[0]):
        resid_in = x
        h = _layernorm(x, ln_w[li], ln_b[li])
        xz = jnp.dot(h, in_w[li], precision=hi) + in_b[li]
        xc, z = xz[..., :E], xz[..., E:]
        xpad = jnp.pad(xc, ((0, 0), (pad, pad), (0, 0)))
        acc = jnp.broadcast_to(conv_b[li].reshape(1, 1, E), (B_, L, E))
        for k in range(K):
            acc = acc + conv_w[li][k].reshape(1, 1, E) * xpad[:, k:k + L]
        xs = _silu(acc)
        proj = jnp.dot(xs, xp_w[li], precision=hi) + xp_b[li]
        dt_low, Bm, Cm = proj[..., :R], proj[..., R:R + N], proj[..., R + N:]
        A = -jnp.exp(a_log[li])                                    # (E, N)
        dt = _softplus(jnp.dot(dt_low, dt_w[li], precision=hi) + dt_b[li])
        dA = jnp.exp(dt[..., None] * A[None, None])                # (B, L, E, N)
        dBX = dt[..., None] * Bm[:, :, None, :] * xs[..., None]
        for i in range(int(math.log2(L))):                         # doubling scan
            s = 2 ** i
            dBX = dBX.at[:, s:].set(dA[:, s:] * dBX[:, :-s] + dBX[:, s:])
            dA = dA.at[:, s:].set(dA[:, s:] * dA[:, :-s])
        y = jnp.sum(dBX * Cm[:, :, None, :], axis=-1)
        out = jnp.dot(y * _silu(z), out_w[li], precision=hi) + out_b[li]
        x = _layernorm(out + resid_in, mln_w, mln_b)
    return jnp.dot(x[:, -1], head_w_t, precision=hi)


# ------------------------------ parameter init --------------------------------

def init_params(key, num_tokens, d_model, n_layers, expansion, d_rank,
                d_hidden, dt_min, dt_max, kernel_size):
    E = int(d_model * expansion)
    R, N, K = d_rank, d_hidden, kernel_size

    keys = jax.random.split(key, 2 + n_layers)
    emb = jax.random.normal(keys[0], (num_tokens, d_model), jnp.float32)
    bh = 1.0 / math.sqrt(d_model)
    head_w = jax.random.uniform(keys[1], (num_tokens, d_model), jnp.float32, -bh, bh)
    mln_w = jnp.ones((1, d_model), jnp.float32)
    mln_b = jnp.zeros((1, d_model), jnp.float32)

    per_layer = []
    for li in range(n_layers):
        lk = jax.random.split(keys[2 + li], 10)
        ln_w = jnp.ones((1, d_model), jnp.float32)
        ln_b = jnp.zeros((1, d_model), jnp.float32)

        b = 1.0 / math.sqrt(d_model)
        in_w = jax.random.uniform(lk[0], (2 * E, d_model), jnp.float32, -b, b)
        in_b = jax.random.uniform(lk[1], (1, 2 * E), jnp.float32, -b, b)

        bc = 1.0 / math.sqrt(K)            # depthwise conv fan_in = 1 * K
        conv_w = jax.random.uniform(lk[2], (E, K), jnp.float32, -bc, bc)
        conv_b = jax.random.uniform(lk[3], (1, E), jnp.float32, -bc, bc)

        bx = 1.0 / math.sqrt(E)
        xp_w = jax.random.uniform(lk[4], (R + 2 * N, E), jnp.float32, -bx, bx)
        xp_b = jax.random.uniform(lk[5], (1, R + 2 * N), jnp.float32, -bx, bx)

        dt_std = 1.0 / math.sqrt(R)
        dt_w = jax.random.uniform(lk[6], (E, R), jnp.float32, -dt_std, dt_std)
        u = jax.random.uniform(lk[7], (E,), jnp.float32)
        dt = jnp.exp(u * (math.log(dt_max) - math.log(dt_min)) + math.log(dt_min))
        dt = jnp.maximum(dt, dt_min)
        dt_b = (dt + jnp.log(-jnp.expm1(-dt))).reshape(1, E)   # softplus^-1(dt)

        a_log = jnp.log(jnp.tile(jnp.arange(1, N + 1, dtype=jnp.float32)[None, :],
                                 (E, 1)))                       # (E, N)

        bo = 1.0 / math.sqrt(E)
        out_w = jax.random.uniform(lk[8], (d_model, E), jnp.float32, -bo, bo)
        out_b = jax.random.uniform(lk[9], (1, d_model), jnp.float32, -bo, bo)

        # pre-transpose weights to (in, out); conv weight to (K, E)
        per_layer.append((ln_w, ln_b,
                          in_w.T, in_b,
                          conv_w.T, conv_b,
                          xp_w.T, xp_b,
                          dt_w.T, dt_b,
                          a_log,
                          out_w.T, out_b))

    stacked = tuple(jnp.stack([p[f] for p in per_layer], axis=0)
                    for f in range(len(per_layer[0])))
    return emb, stacked, mln_w, mln_b, head_w.T


# ------------------------------------ main -------------------------------------

if __name__ == "__main__":
    # small-but-representative config
    num_tokens = 64
    d_model = 32
    n_layers = 2
    expansion = 2
    d_hidden = 16
    kernel_size = 5
    dt_min, dt_max = 0.001, 0.1
    d_rank = math.ceil(d_model / 16)       # module default when d_rank is None
    B, L = 2, 8                            # L power of two (scan exactness)

    key = jax.random.PRNGKey(0)
    pkey, tkey = jax.random.split(key)
    emb, stacked, mln_w, mln_b, head_w_t = init_params(
        pkey, num_tokens, d_model, n_layers, expansion, d_rank,
        d_hidden, dt_min, dt_max, kernel_size)
    tokens = jax.random.randint(tkey, (B, L), 0, num_tokens, dtype=jnp.int32)

    logits = mamba_llm_forward(tokens, emb, stacked, mln_w, mln_b, head_w_t,
                               kernel_size=kernel_size, d_rank=d_rank,
                               d_hidden=d_hidden)
    logits = jax.block_until_ready(logits)
    assert logits.shape == (B, num_tokens)

    ref = ref_forward(tokens, emb, stacked, mln_w, mln_b, head_w_t,
                      kernel_size=kernel_size, d_rank=d_rank, d_hidden=d_hidden)
    assert bool(jnp.allclose(logits, ref, atol=2e-3, rtol=2e-3)), \
        "Pallas kernel output mismatch vs plain-JAX reference"

    # TODO(synk): cache/one_step incremental-decoding paths rely on mutable
    # module state (conv_cache / cached_state) and are not implemented here.
    # TODO(synk): for very long L, additionally stream L-chunks through HBM
    # (outer L grid axis with a carried (N, E) state), on top of the in-kernel
    # chunked scan implemented here.
    print("KERNEL_OK")
</pallas_src>

<mosaic_0001>
module attributes {stable_mosaic.version = 11 : i64} {
  func.func @_fused_layers_kernel(%arg0: i32, %arg1: i32, %arg2: memref<1x8x32xf32, #tpu.memory_space<vmem>>, %arg3: memref<1x1x32xf32, #tpu.memory_space<vmem>>, %arg4: memref<1x1x32xf32, #tpu.memory_space<vmem>>, %arg5: memref<1x32x128xf32, #tpu.memory_space<vmem>>, %arg6: memref<1x1x128xf32, #tpu.memory_space<vmem>>, %arg7: memref<1x5x64xf32, #tpu.memory_space<vmem>>, %arg8: memref<1x1x64xf32, #tpu.memory_space<vmem>>, %arg9: memref<1x64x34xf32, #tpu.memory_space<vmem>>, %arg10: memref<1x1x34xf32, #tpu.memory_space<vmem>>, %arg11: memref<1x2x64xf32, #tpu.memory_space<vmem>>, %arg12: memref<1x1x64xf32, #tpu.memory_space<vmem>>, %arg13: memref<1x16x64xf32, #tpu.memory_space<vmem>>, %arg14: memref<1x64x32xf32, #tpu.memory_space<vmem>>, %arg15: memref<1x1x32xf32, #tpu.memory_space<vmem>>, %arg16: memref<1x32xf32, #tpu.memory_space<vmem>>, %arg17: memref<1x32xf32, #tpu.memory_space<vmem>>, %arg18: memref<1x8x32xf32, #tpu.memory_space<vmem>>, %arg19: memref<12x64xf32, #tpu.memory_space<vmem>>, %arg20: memref<8x16x64xf32, #tpu.memory_space<vmem>>, %arg21: memref<8x16x64xf32, #tpu.memory_space<vmem>>, %arg22: memref<8x64xf32, #tpu.memory_space<vmem>>) attributes {dimension_semantics = [#tpu.dimension_semantics<parallel>, #tpu.dimension_semantics<arbitrary>], iteration_bounds = array<i64: 2, 2>, scalar_prefetch = 0 : i64, scratch_operands = 4 : i64, tpu.core_type = #tpu.core_type<tc>, window_params = [{transform_indices = @transform_0, window_bounds = array<i64: 1, 8, 32>}, {transform_indices = @transform_1, window_bounds = array<i64: 1, 1, 32>}, {transform_indices = @transform_2, window_bounds = array<i64: 1, 1, 32>}, {transform_indices = @transform_3, window_bounds = array<i64: 1, 32, 128>}, {transform_indices = @transform_4, window_bounds = array<i64: 1, 1, 128>}, {transform_indices = @transform_5, window_bounds = array<i64: 1, 5, 64>}, {transform_indices = @transform_6, window_bounds = array<i64: 1, 1, 64>}, {transform_indices = @transform_7, window_bounds = array<i64: 1, 64, 34>}, {transform_indices = @transform_8, window_bounds = array<i64: 1, 1, 34>}, {transform_indices = @transform_9, window_bounds = array<i64: 1, 2, 64>}, {transform_indices = @transform_10, window_bounds = array<i64: 1, 1, 64>}, {transform_indices = @transform_11, window_bounds = array<i64: 1, 16, 64>}, {transform_indices = @transform_12, window_bounds = array<i64: 1, 64, 32>}, {transform_indices = @transform_13, window_bounds = array<i64: 1, 1, 32>}, {pipeline_mode = #tpu.pipeline_mode<synchronous>, transform_indices = @transform_14, window_bounds = array<i64: 1, 32>}, {pipeline_mode = #tpu.pipeline_mode<synchronous>, transform_indices = @transform_15, window_bounds = array<i64: 1, 32>}, {transform_indices = @transform_16, window_bounds = array<i64: 1, 8, 32>}]} {
    %c0_i32 = arith.constant 0 : i32
    %0 = arith.cmpi eq, %arg1, %c0_i32 : i32
    %1 = arith.extui %0 : i1 to i32
    %c0_i32_0 = arith.constant 0 : i32
    %2 = arith.cmpi ne, %1, %c0_i32_0 : i32
    scf.if %2 {
      %c0_151 = arith.constant 0 : index
      %c0_152 = arith.constant 0 : index
      %c0_153 = arith.constant 0 : index
      %205 = vector.load %arg2[%c0_151, %c0_152, %c0_153] : memref<1x8x32xf32, #tpu.memory_space<vmem>>, vector<1x8x32xf32>
      %c0_154 = arith.constant 0 : index
      %c0_155 = arith.constant 0 : index
      %c0_156 = arith.constant 0 : index
      %206 = vector.load %arg18[%c0_154, %c0_155, %c0_156] : memref<1x8x32xf32, #tpu.memory_space<vmem>>, vector<1x8x32xf32>
      tpu.vector_store %arg18[%c0_154, %c0_155, %c0_156], %205 {strides = array<i32>} : memref<1x8x32xf32, #tpu.memory_space<vmem>>, vector<1x8x32xf32>,
    } else {
    }
    %c0 = arith.constant 0 : index
    %c0_1 = arith.constant 0 : index
    %c0_2 = arith.constant 0 : index
    %3 = vector.load %arg18[%c0, %c0_1, %c0_2] : memref<1x8x32xf32, #tpu.memory_space<vmem>>, vector<1x8x32xf32>
    %4 = vector.shape_cast %3 : vector<1x8x32xf32> to vector<8x32xf32>
    %c0_3 = arith.constant 0 : index
    %c0_4 = arith.constant 0 : index
    %c0_5 = arith.constant 0 : index
    %5 = vector.load %arg3[%c0_3, %c0_4, %c0_5] : memref<1x1x32xf32, #tpu.memory_space<vmem>>, vector<1x1x32xf32>
    %6 = vector.shape_cast %5 : vector<1x1x32xf32> to vector<1x32xf32>
    %c0_6 = arith.constant 0 : index
    %c0_7 = arith.constant 0 : index
    %c0_8 = arith.constant 0 : index
    %7 = vector.load %arg4[%c0_6, %c0_7, %c0_8] : memref<1x1x32xf32, #tpu.memory_space<vmem>>, vector<1x1x32xf32>
    %8 = vector.shape_cast %7 : vector<1x1x32xf32> to vector<1x32xf32>
    %cst = arith.constant dense<0.000000e+00> : vector<8xf32>
    %9 = vector.multi_reduction <add>, %4, %cst [1] : vector<8x32xf32> to vector<8xf32>
    %10 = vector.shape_cast %9 : vector<8xf32> to vector<8x1xf32>
    %cst_9 = arith.constant 3.200000e+01 : f32
    %11 = vector.broadcast %cst_9 : f32 to vector<8x1xf32>
    %12 = arith.divf %10, %11 : vector<8x1xf32>
    %13 = vector.broadcast %12 : vector<8x1xf32> to vector<8x32xf32>
    %14 = arith.subf %4, %13 : vector<8x32xf32>
    %15 = arith.mulf %14, %14 : vector<8x32xf32>
    %cst_10 = arith.constant dense<0.000000e+00> : vector<8xf32>
    %16 = vector.multi_reduction <add>, %15, %cst_10 [1] : vector<8x32xf32> to vector<8xf32>
    %17 = vector.shape_cast %16 : vector<8xf32> to vector<8x1xf32>
    %cst_11 = arith.constant 3.200000e+01 : f32
    %18 = vector.broadcast %cst_11 : f32 to vector<8x1xf32>
    %19 = arith.divf %17, %18 : vector<8x1xf32>
    %20 = vector.broadcast %12 : vector<8x1xf32> to vector<8x32xf32>
    %21 = arith.subf %4, %20 : vector<8x32xf32>
    %cst_12 = arith.constant 9.99999974E-6 : f32
    %22 = vector.broadcast %cst_12 : f32 to vector<8x1xf32>
    %23 = arith.addf %19, %22 : vector<8x1xf32>
    %24 = math.rsqrt %23 : vector<8x1xf32>
    %25 = vector.broadcast %24 : vector<8x1xf32> to vector<8x32xf32>
    %26 = arith.mulf %21, %25 : vector<8x32xf32>
    %27 = vector.broadcast %6 : vector<1x32xf32> to vector<8x32xf32>
    %28 = arith.mulf %26, %27 : vector<8x32xf32>
    %29 = vector.broadcast %8 : vector<1x32xf32> to vector<8x32xf32>
    %30 = arith.addf %28, %29 : vector<8x32xf32>
    %c0_13 = arith.constant 0 : index
    %c0_14 = arith.constant 0 : index
    %c0_15 = arith.constant 0 : index
    %31 = vector.load %arg5[%c0_13, %c0_14, %c0_15] : memref<1x32x128xf32, #tpu.memory_space<vmem>>, vector<1x32x128xf32>
    %32 = vector.shape_cast %31 : vector<1x32x128xf32> to vector<32x128xf32>
    %cst_16 = arith.constant dense<0.000000e+00> : vector<8x128xf32>
    %33 = tpu.matmul %30, %32, %cst_16 {dimension_numbers = #tpu.dot_dimension_numbers<[1], [0], [0], [1], [0, 0, 1, 1], [], []>} : vector<8x32xf32>, vector<32x128xf32>, vector<8x128xf32> -> vector<8x128xf32>
    %c0_17 = arith.constant 0 : index
    %c0_18 = arith.constant 0 : index
    %c0_19 = arith.constant 0 : index
    %34 = vector.load %arg6[%c0_17, %c0_18, %c0_19] : memref<1x1x128xf32, #tpu.memory_space<vmem>>, vector<1x1x128xf32>
    %35 = vector.shape_cast %34 : vector<1x1x128xf32> to vector<1x128xf32>
    %36 = vector.broadcast %35 : vector<1x128xf32> to vector<8x128xf32>
    %37 = arith.addf %33, %36 : vector<8x128xf32>
    %38 = vector.extract_strided_slice %37 {offsets = [0, 0], sizes = [8, 64], strides = [1, 1]} : vector<8x128xf32> to vector<8x64xf32>
    %39 = vector.extract_strided_slice %37 {offsets = [0, 64], sizes = [8, 64], strides = [1, 1]} : vector<8x128xf32> to vector<8x64xf32>
    %cst_20 = arith.constant 0.000000e+00 : f32
    %40 = vector.broadcast %cst_20 : f32 to vector<2x64xf32>
    %c0_21 = arith.constant 0 : index
    %c0_22 = arith.constant 0 : index
    %41 = vector.load %arg19[%c0_21, %c0_22] : memref<12x64xf32, #tpu.memory_space<vmem>>, vector<2x64xf32>
    tpu.vector_store %arg19[%c0_21, %c0_22], %40 {strides = array<i32>} : memref<12x64xf32, #tpu.memory_space<vmem>>, vector<2x64xf32>,
    %cst_23 = arith.constant 0.000000e+00 : f32
    %42 = vector.broadcast %cst_23 : f32 to vector<2x64xf32>
    %c10 = arith.constant 10 : index
    %c0_24 = arith.constant 0 : index
    %43 = vector.load %arg19[%c10, %c0_24] : memref<12x64xf32, #tpu.memory_space<vmem>>, vector<2x64xf32>
    tpu.vector_store %arg19[%c10, %c0_24], %42 {strides = array<i32>} : memref<12x64xf32, #tpu.memory_space<vmem>>, vector<2x64xf32>,
    %c2 = arith.constant 2 : index
    %c0_25 = arith.constant 0 : index
    %44 = vector.load %arg19[%c2, %c0_25] : memref<12x64xf32, #tpu.memory_space<vmem>>, vector<8x64xf32>
    tpu.vector_store %arg19[%c2, %c0_25], %38 {strides = array<i32>} : memref<12x64xf32, #tpu.memory_space<vmem>>, vector<8x64xf32>,
    %c0_26 = arith.constant 0 : index
    %c0_27 = arith.constant 0 : index
    %c0_28 = arith.constant 0 : index
    %45 = vector.load %arg7[%c0_26, %c0_27, %c0_28] : memref<1x5x64xf32, #tpu.memory_space<vmem>>, vector<1x5x64xf32>
    %46 = vector.shape_cast %45 : vector<1x5x64xf32> to vector<5x64xf32>
    %c0_29 = arith.constant 0 : index
    %c0_30 = arith.constant 0 : index
    %c0_31 = arith.constant 0 : index
    %47 = vector.load %arg8[%c0_29, %c0_30, %c0_31] : memref<1x1x64xf32, #tpu.memory_space<vmem>>, vector<1x1x64xf32>
    %48 = vector.shape_cast %47 : vector<1x1x64xf32> to vector<1x64xf32>
    %49 = vector.shape_cast %48 : vector<1x64xf32> to vector<1x64xf32>
    %50 = vector.broadcast %49 : vector<1x64xf32> to vector<8x64xf32>
    %51 = vector.extract_strided_slice %46 {offsets = [0, 0], sizes = [1, 64], strides = [1, 1]} : vector<5x64xf32> to vector<1x64xf32>
    %c0_32 = arith.constant 0 : index
    %c0_33 = arith.constant 0 : index
    %52 = vector.load %arg19[%c0_32, %c0_33] : memref<12x64xf32, #tpu.memory_space<vmem>>, vector<8x64xf32>
    %53 = vector.broadcast %51 : vector<1x64xf32> to vector<8x64xf32>
    %54 = arith.mulf %53, %52 : vector<8x64xf32>
    %55 = arith.addf %50, %54 : vector<8x64xf32>
    %56 = vector.extract_strided_slice %46 {offsets = [1, 0], sizes = [1, 64], strides = [1, 1]} : vector<5x64xf32> to vector<1x64xf32>
    %c1 = arith.constant 1 : index
    %c0_34 = arith.constant 0 : index
    %57 = vector.load %arg19[%c1, %c0_34] : memref<12x64xf32, #tpu.memory_space<vmem>>, vector<8x64xf32>
    %58 = vector.broadcast %56 : vector<1x64xf32> to vector<8x64xf32>
    %59 = arith.mulf %58, %57 : vector<8x64xf32>
    %60 = arith.addf %55, %59 : vector<8x64xf32>
    %61 = vector.extract_strided_slice %46 {offsets = [2, 0], sizes = [1, 64], strides = [1, 1]} : vector<5x64xf32> to vector<1x64xf32>
    %c2_35 = arith.constant 2 : index
    %c0_36 = arith.constant 0 : index
    %62 = vector.load %arg19[%c2_35, %c0_36] : memref<12x64xf32, #tpu.memory_space<vmem>>, vector<8x64xf32>
    %63 = vector.broadcast %61 : vector<1x64xf32> to vector<8x64xf32>
    %64 = arith.mulf %63, %62 : vector<8x64xf32>
    %65 = arith.addf %60, %64 : vector<8x64xf32>
    %66 = vector.extract_strided_slice %46 {offsets = [3, 0], sizes = [1, 64], strides = [1, 1]} : vector<5x64xf32> to vector<1x64xf32>
    %c3 = arith.constant 3 : index
    %c0_37 = arith.constant 0 : index
    %67 = vector.load %arg19[%c3, %c0_37] : memref<12x64xf32, #tpu.memory_space<vmem>>, vector<8x64xf32>
    %68 = vector.broadcast %66 : vector<1x64xf32> to vector<8x64xf32>
    %69 = arith.mulf %68, %67 : vector<8x64xf32>
    %70 = arith.addf %65, %69 : vector<8x64xf32>
    %71 = vector.extract_strided_slice %46 {offsets = [4, 0], sizes = [1, 64], strides = [1, 1]} : vector<5x64xf32> to vector<1x64xf32>
    %c4 = arith.constant 4 : index
    %c0_38 = arith.constant 0 : index
    %72 = vector.load %arg19[%c4, %c0_38] : memref<12x64xf32, #tpu.memory_space<vmem>>, vector<8x64xf32>
    %73 = vector.broadcast %71 : vector<1x64xf32> to vector<8x64xf32>
    %74 = arith.mulf %73, %72 : vector<8x64xf32>
    %75 = arith.addf %70, %74 : vector<8x64xf32>
    %76 = arith.negf %75 : vector<8x64xf32>
    %77 = math.exp %76 : vector<8x64xf32>
    %cst_39 = arith.constant 1.000000e+00 : f32
    %78 = vector.broadcast %cst_39 : f32 to vector<8x64xf32>
    %79 = arith.addf %78, %77 : vector<8x64xf32>
    %80 = arith.divf %78, %79 : vector<8x64xf32>
    %81 = arith.mulf %75, %80 : vector<8x64xf32>
    %c0_40 = arith.constant 0 : index
    %c0_41 = arith.constant 0 : index
    %c0_42 = arith.constant 0 : index
    %82 = vector.load %arg9[%c0_40, %c0_41, %c0_42] : memref<1x64x34xf32, #tpu.memory_space<vmem>>, vector<1x64x34xf32>
    %83 = vector.shape_cast %82 : vector<1x64x34xf32> to vector<64x34xf32>
    %cst_43 = arith.constant dense<0.000000e+00> : vector<8x34xf32>
    %84 = tpu.matmul %81, %83, %cst_43 {dimension_numbers = #tpu.dot_dimension_numbers<[1], [0], [0], [1], [0, 0, 1, 1], [], []>} : vector<8x64xf32>, vector<64x34xf32>, vector<8x34xf32> -> vector<8x34xf32>
    %c0_44 = arith.constant 0 : index
    %c0_45 = arith.constant 0 : index
    %c0_46 = arith.constant 0 : index
    %85 = vector.load %arg10[%c0_44, %c0_45, %c0_46] : memref<1x1x34xf32, #tpu.memory_space<vmem>>, vector<1x1x34xf32>
    %86 = vector.shape_cast %85 : vector<1x1x34xf32> to vector<1x34xf32>
    %87 = vector.broadcast %86 : vector<1x34xf32> to vector<8x34xf32>
    %88 = arith.addf %84, %87 : vector<8x34xf32>
    %89 = vector.extract_strided_slice %88 {offsets = [0, 0], sizes = [8, 2], strides = [1, 1]} : vector<8x34xf32> to vector<8x2xf32>
    %90 = vector.extract_strided_slice %88 {offsets = [0, 2], sizes = [8, 16], strides = [1, 1]} : vector<8x34xf32> to vector<8x16xf32>
    %91 = vector.extract_strided_slice %88 {offsets = [0, 18], sizes = [8, 16], strides = [1, 1]} : vector<8x34xf32> to vector<8x16xf32>
    %c0_47 = arith.constant 0 : index
    %c0_48 = arith.constant 0 : index
    %c0_49 = arith.constant 0 : index
    %92 = vector.load %arg11[%c0_47, %c0_48, %c0_49] : memref<1x2x64xf32, #tpu.memory_space<vmem>>, vector<1x2x64xf32>
    %93 = vector.shape_cast %92 : vector<1x2x64xf32> to vector<2x64xf32>
    %cst_50 = arith.constant dense<0.000000e+00> : vector<8x64xf32>
    %94 = tpu.matmul %89, %93, %cst_50 {dimension_numbers = #tpu.dot_dimension_numbers<[1], [0], [0], [1], [0, 0, 1, 1], [], []>} : vector<8x2xf32>, vector<2x64xf32>, vector<8x64xf32> -> vector<8x64xf32>
    %c0_51 = arith.constant 0 : index
    %c0_52 = arith.constant 0 : index
    %c0_53 = arith.constant 0 : index
    %95 = vector.load %arg12[%c0_51, %c0_52, %c0_53] : memref<1x1x64xf32, #tpu.memory_space<vmem>>, vector<1x1x64xf32>
    %96 = vector.shape_cast %95 : vector<1x1x64xf32> to vector<1x64xf32>
    %97 = vector.broadcast %96 : vector<1x64xf32> to vector<8x64xf32>
    %98 = arith.addf %94, %97 : vector<8x64xf32>
    %cst_54 = arith.constant 0.000000e+00 : f32
    %99 = vector.broadcast %cst_54 : f32 to vector<8x64xf32>
    %100 = arith.maximumf %98, %99 : vector<8x64xf32>
    %101 = math.absf %98 : vector<8x64xf32>
    %cst_55 = arith.constant 0.000000e+00 : f32
    %102 = vector.broadcast %cst_55 : f32 to vector<8x64xf32>
    %103 = arith.subf %102, %101 : vector<8x64xf32>
    %104 = math.exp %103 : vector<8x64xf32>
    %105 = math.log1p %104 : vector<8x64xf32>
    %106 = arith.addf %100, %105 : vector<8x64xf32>
    %c0_56 = arith.constant 0 : index
    %c0_57 = arith.constant 0 : index
    %c0_58 = arith.constant 0 : index
    %107 = vector.load %arg13[%c0_56, %c0_57, %c0_58] : memref<1x16x64xf32, #tpu.memory_space<vmem>>, vector<1x16x64xf32>
    %108 = vector.shape_cast %107 : vector<1x16x64xf32> to vector<16x64xf32>
    %109 = arith.mulf %106, %81 : vector<8x64xf32>
    %cst_59 = arith.constant 0.000000e+00 : f32
    %110 = vector.broadcast %cst_59 : f32 to vector<16x64xf32>
    %111 = vector.shape_cast %106 : vector<8x64xf32> to vector<8x1x64xf32>
    %112 = vector.shape_cast %108 : vector<16x64xf32> to vector<1x16x64xf32>
    %113 = vector.broadcast %111 : vector<8x1x64xf32> to vector<8x16x64xf32>
    %114 = vector.broadcast %112 : vector<1x16x64xf32> to vector<8x16x64xf32>
    %115 = arith.mulf %113, %114 : vector<8x16x64xf32>
    %116 = math.exp %115 : vector<8x16x64xf32>
    %c0_60 = arith.constant 0 : index
    %c0_61 = arith.constant 0 : index
    %c0_62 = arith.constant 0 : index
    %117 = vector.load %arg20[%c0_60, %c0_61, %c0_62] : memref<8x16x64xf32, #tpu.memory_space<vmem>>, vector<8x16x64xf32>
    tpu.vector_store %arg20[%c0_60, %c0_61, %c0_62], %116 {strides = array<i32>} : memref<8x16x64xf32, #tpu.memory_space<vmem>>, vector<8x16x64xf32>,
    %118 = vector.shape_cast %109 : vector<8x64xf32> to vector<8x1x64xf32>
    %119 = vector.shape_cast %90 : vector<8x16xf32> to vector<8x16x1xf32>
    %120 = vector.broadcast %118 : vector<8x1x64xf32> to vector<8x16x64xf32>
    %121 = vector.broadcast %119 : vector<8x16x1xf32> to vector<8x16x64xf32>
    %122 = arith.mulf %120, %121 : vector<8x16x64xf32>
    %c0_63 = arith.constant 0 : index
    %c0_64 = arith.constant 0 : index
    %c0_65 = arith.constant 0 : index
    %123 = vector.load %arg21[%c0_63, %c0_64, %c0_65] : memref<8x16x64xf32, #tpu.memory_space<vmem>>, vector<8x16x64xf32>
    tpu.vector_store %arg21[%c0_63, %c0_64, %c0_65], %122 {strides = array<i32>} : memref<8x16x64xf32, #tpu.memory_space<vmem>>, vector<8x16x64xf32>,
    %c1_66 = arith.constant 1 : index
    %c0_67 = arith.constant 0 : index
    %c0_68 = arith.constant 0 : index
    %124 = vector.load %arg20[%c1_66, %c0_67, %c0_68] : memref<8x16x64xf32, #tpu.memory_space<vmem>>, vector<7x16x64xf32>
    %c0_69 = arith.constant 0 : index
    %c0_70 = arith.constant 0 : index
    %c0_71 = arith.constant 0 : index
    %125 = vector.load %arg20[%c0_69, %c0_70, %c0_71] : memref<8x16x64xf32, #tpu.memory_space<vmem>>, vector<7x16x64xf32>
    %c0_72 = arith.constant 0 : index
    %c0_73 = arith.constant 0 : index
    %c0_74 = arith.constant 0 : index
    %126 = vector.load %arg21[%c0_72, %c0_73, %c0_74] : memref<8x16x64xf32, #tpu.memory_space<vmem>>, vector<7x16x64xf32>
    %c1_75 = arith.constant 1 : index
    %c0_76 = arith.constant 0 : index
    %c0_77 = arith.constant 0 : index
    %127 = vector.load %arg21[%c1_75, %c0_76, %c0_77] : memref<8x16x64xf32, #tpu.memory_space<vmem>>, vector<7x16x64xf32>
    %128 = arith.mulf %124, %126 : vector<7x16x64xf32>
    %129 = arith.addf %128, %127 : vector<7x16x64xf32>
    %c1_78 = arith.constant 1 : index
    %c0_79 = arith.constant 0 : index
    %c0_80 = arith.constant 0 : index
    %130 = vector.load %arg21[%c1_78, %c0_79, %c0_80] : memref<8x16x64xf32, #tpu.memory_space<vmem>>, vector<7x16x64xf32>
    tpu.vector_store %arg21[%c1_78, %c0_79, %c0_80], %129 {strides = array<i32>} : memref<8x16x64xf32, #tpu.memory_space<vmem>>, vector<7x16x64xf32>,
    %131 = arith.mulf %124, %125 : vector<7x16x64xf32>
    %c1_81 = arith.constant 1 : index
    %c0_82 = arith.constant 0 : index
    %c0_83 = arith.constant 0 : index
    %132 = vector.load %arg20[%c1_81, %c0_82, %c0_83] : memref<8x16x64xf32, #tpu.memory_space<vmem>>, vector<7x16x64xf32>
    tpu.vector_store %arg20[%c1_81, %c0_82, %c0_83], %131 {strides = array<i32>} : memref<8x16x64xf32, #tpu.memory_space<vmem>>, vector<7x16x64xf32>,
    %c2_84 = arith.constant 2 : index
    %c0_85 = arith.constant 0 : index
    %c0_86 = arith.constant 0 : index
    %133 = vector.load %arg20[%c2_84, %c0_85, %c0_86] : memref<8x16x64xf32, #tpu.memory_space<vmem>>, vector<6x16x64xf32>
    %c0_87 = arith.constant 0 : index
    %c0_88 = arith.constant 0 : index
    %c0_89 = arith.constant 0 : index
    %134 = vector.load %arg20[%c0_87, %c0_88, %c0_89] : memref<8x16x64xf32, #tpu.memory_space<vmem>>, vector<6x16x64xf32>
    %c0_90 = arith.constant 0 : index
    %c0_91 = arith.constant 0 : index
    %c0_92 = arith.constant 0 : index
    %135 = vector.load %arg21[%c0_90, %c0_91, %c0_92] : memref<8x16x64xf32, #tpu.memory_space<vmem>>, vector<6x16x64xf32>
    %c2_93 = arith.constant 2 : index
    %c0_94 = arith.constant 0 : index
    %c0_95 = arith.constant 0 : index
    %136 = vector.load %arg21[%c2_93, %c0_94, %c0_95] : memref<8x16x64xf32, #tpu.memory_space<vmem>>, vector<6x16x64xf32>
    %137 = arith.mulf %133, %135 : vector<6x16x64xf32>
    %138 = arith.addf %137, %136 : vector<6x16x64xf32>
    %c2_96 = arith.constant 2 : index
    %c0_97 = arith.constant 0 : index
    %c0_98 = arith.constant 0 : index
    %139 = vector.load %arg21[%c2_96, %c0_97, %c0_98] : memref<8x16x64xf32, #tpu.memory_space<vmem>>, vector<6x16x64xf32>
    tpu.vector_store %arg21[%c2_96, %c0_97, %c0_98], %138 {strides = array<i32>} : memref<8x16x64xf32, #tpu.memory_space<vmem>>, vector<6x16x64xf32>,
    %140 = arith.mulf %133, %134 : vector<6x16x64xf32>
    %c2_99 = arith.constant 2 : index
    %c0_100 = arith.constant 0 : index
    %c0_101 = arith.constant 0 : index
    %141 = vector.load %arg20[%c2_99, %c0_100, %c0_101] : memref<8x16x64xf32, #tpu.memory_space<vmem>>, vector<6x16x64xf32>
    tpu.vector_store %arg20[%c2_99, %c0_100, %c0_101], %140 {strides = array<i32>} : memref<8x16x64xf32, #tpu.memory_space<vmem>>, vector<6x16x64xf32>,
    %c4_102 = arith.constant 4 : index
    %c0_103 = arith.constant 0 : index
    %c0_104 = arith.constant 0 : index
    %142 = vector.load %arg20[%c4_102, %c0_103, %c0_104] : memref<8x16x64xf32, #tpu.memory_space<vmem>>, vector<4x16x64xf32>
    %c0_105 = arith.constant 0 : index
    %c0_106 = arith.constant 0 : index
    %c0_107 = arith.constant 0 : index
    %143 = vector.load %arg20[%c0_105, %c0_106, %c0_107] : memref<8x16x64xf32, #tpu.memory_space<vmem>>, vector<4x16x64xf32>
    %c0_108 = arith.constant 0 : index
    %c0_109 = arith.constant 0 : index
    %c0_110 = arith.constant 0 : index
    %144 = vector.load %arg21[%c0_108, %c0_109, %c0_110] : memref<8x16x64xf32, #tpu.memory_space<vmem>>, vector<4x16x64xf32>
    %c4_111 = arith.constant 4 : index
    %c0_112 = arith.constant 0 : index
    %c0_113 = arith.constant 0 : index
    %145 = vector.load %arg21[%c4_111, %c0_112, %c0_113] : memref<8x16x64xf32, #tpu.memory_space<vmem>>, vector<4x16x64xf32>
    %146 = arith.mulf %142, %144 : vector<4x16x64xf32>
    %147 = arith.addf %146, %145 : vector<4x16x64xf32>
    %c4_114 = arith.constant 4 : index
    %c0_115 = arith.constant 0 : index
    %c0_116 = arith.constant 0 : index
    %148 = vector.load %arg21[%c4_114, %c0_115, %c0_116] : memref<8x16x64xf32, #tpu.memory_space<vmem>>, vector<4x16x64xf32>
    tpu.vector_store %arg21[%c4_114, %c0_115, %c0_116], %147 {strides = array<i32>} : memref<8x16x64xf32, #tpu.memory_space<vmem>>, vector<4x16x64xf32>,
    %149 = arith.mulf %142, %143 : vector<4x16x64xf32>
    %c4_117 = arith.constant 4 : index
    %c0_118 = arith.constant 0 : index
    %c0_119 = arith.constant 0 : index
    %150 = vector.load %arg20[%c4_117, %c0_118, %c0_119] : memref<8x16x64xf32, #tpu.memory_space<vmem>>, vector<4x16x64xf32>
    tpu.vector_store %arg20[%c4_117, %c0_118, %c0_119], %149 {strides = array<i32>} : memref<8x16x64xf32, #tpu.memory_space<vmem>>, vector<4x16x64xf32>,
    %c0_120 = arith.constant 0 : index
    %c0_121 = arith.constant 0 : index
    %c0_122 = arith.constant 0 : index
    %151 = vector.load %arg20[%c0_120, %c0_121, %c0_122] : memref<8x16x64xf32, #tpu.memory_space<vmem>>, vector<8x16x64xf32>
    %152 = vector.shape_cast %110 : vector<16x64xf32> to vector<1x16x64xf32>
    %153 = vector.broadcast %152 : vector<1x16x64xf32> to vector<8x16x64xf32>
    %154 = arith.mulf %151, %153 : vector<8x16x64xf32>
    %c0_123 = arith.constant 0 : index
    %c0_124 = arith.constant 0 : index
    %c0_125 = arith.constant 0 : index
    %155 = vector.load %arg21[%c0_123, %c0_124, %c0_125] : memref<8x16x64xf32, #tpu.memory_space<vmem>>, vector<8x16x64xf32>
    %156 = arith.addf %154, %155 : vector<8x16x64xf32>
    %157 = vector.shape_cast %91 : vector<8x16xf32> to vector<8x16x1xf32>
    %158 = vector.broadcast %157 : vector<8x16x1xf32> to vector<8x16x64xf32>
    %159 = arith.mulf %156, %158 : vector<8x16x64xf32>
    %cst_126 = arith.constant dense<0.000000e+00> : vector<8x64xf32>
    %160 = vector.multi_reduction <add>, %159, %cst_126 [1] : vector<8x16x64xf32> to vector<8x64xf32>
    %c0_127 = arith.constant 0 : index
    %c0_128 = arith.constant 0 : index
    %161 = vector.load %arg22[%c0_127, %c0_128] : memref<8x64xf32, #tpu.memory_space<vmem>>, vector<8x64xf32>
    tpu.vector_store %arg22[%c0_127, %c0_128], %160 {strides = array<i32>} : memref<8x64xf32, #tpu.memory_space<vmem>>, vector<8x64xf32>,
    %c0_129 = arith.constant 0 : index
    %c0_130 = arith.constant 0 : index
    %162 = vector.load %arg22[%c0_129, %c0_130] : memref<8x64xf32, #tpu.memory_space<vmem>>, vector<8x64xf32>
    %163 = arith.negf %39 : vector<8x64xf32>
    %164 = math.exp %163 : vector<8x64xf32>
    %cst_131 = arith.constant 1.000000e+00 : f32
    %165 = vector.broadcast %cst_131 : f32 to vector<8x64xf32>
    %166 = arith.addf %165, %164 : vector<8x64xf32>
    %167 = arith.divf %165, %166 : vector<8x64xf32>
    %168 = arith.mulf %39, %167 : vector<8x64xf32>
    %169 = arith.mulf %162, %168 : vector<8x64xf32>
    %c0_132 = arith.constant 0 : index
    %c0_133 = arith.constant 0 : index
    %c0_134 = arith.constant 0 : index
    %170 = vector.load %arg14[%c0_132, %c0_133, %c0_134] : memref<1x64x32xf32, #tpu.memory_space<vmem>>, vector<1x64x32xf32>
    %171 = vector.shape_cast %170 : vector<1x64x32xf32> to vector<64x32xf32>
    %cst_135 = arith.constant dense<0.000000e+00> : vector<8x32xf32>
    %172 = tpu.matmul %169, %171, %cst_135 {dimension_numbers = #tpu.dot_dimension_numbers<[1], [0], [0], [1], [0, 0, 1, 1], [], []>} : vector<8x64xf32>, vector<64x32xf32>, vector<8x32xf32> -> vector<8x32xf32>
    %c0_136 = arith.constant 0 : index
    %c0_137 = arith.constant 0 : index
    %c0_138 = arith.constant 0 : index
    %173 = vector.load %arg15[%c0_136, %c0_137, %c0_138] : memref<1x1x32xf32, #tpu.memory_space<vmem>>, vector<1x1x32xf32>
    %174 = vector.shape_cast %173 : vector<1x1x32xf32> to vector<1x32xf32>
    %175 = vector.broadcast %174 : vector<1x32xf32> to vector<8x32xf32>
    %176 = arith.addf %172, %175 : vector<8x32xf32>
    %177 = arith.addf %176, %4 : vector<8x32xf32>
    %c0_139 = arith.constant 0 : index
    %c0_140 = arith.constant 0 : index
    %178 = vector.load %arg16[%c0_139, %c0_140] : memref<1x32xf32, #tpu.memory_space<vmem>>, vector<1x32xf32>
    %c0_141 = arith.constant 0 : index
    %c0_142 = arith.constant 0 : index
    %179 = vector.load %arg17[%c0_141, %c0_142] : memref<1x32xf32, #tpu.memory_space<vmem>>, vector<1x32xf32>
    %cst_143 = arith.constant dense<0.000000e+00> : vector<8xf32>
    %180 = vector.multi_reduction <add>, %177, %cst_143 [1] : vector<8x32xf32> to vector<8xf32>
    %181 = vector.shape_cast %180 : vector<8xf32> to vector<8x1xf32>
    %cst_144 = arith.constant 3.200000e+01 : f32
    %182 = vector.broadcast %cst_144 : f32 to vector<8x1xf32>
    %183 = arith.divf %181, %182 : vector<8x1xf32>
    %184 = vector.broadcast %183 : vector<8x1xf32> to vector<8x32xf32>
    %185 = arith.subf %177, %184 : vector<8x32xf32>
    %186 = arith.mulf %185, %185 : vector<8x32xf32>
    %cst_145 = arith.constant dense<0.000000e+00> : vector<8xf32>
    %187 = vector.multi_reduction <add>, %186, %cst_145 [1] : vector<8x32xf32> to vector<8xf32>
    %188 = vector.shape_cast %187 : vector<8xf32> to vector<8x1xf32>
    %cst_146 = arith.constant 3.200000e+01 : f32
    %189 = vector.broadcast %cst_146 : f32 to vector<8x1xf32>
    %190 = arith.divf %188, %189 : vector<8x1xf32>
    %191 = vector.broadcast %183 : vector<8x1xf32> to vector<8x32xf32>
    %192 = arith.subf %177, %191 : vector<8x32xf32>
    %cst_147 = arith.constant 9.99999974E-6 : f32
    %193 = vector.broadcast %cst_147 : f32 to vector<8x1xf32>
    %194 = arith.addf %190, %193 : vector<8x1xf32>
    %195 = math.rsqrt %194 : vector<8x1xf32>
    %196 = vector.broadcast %195 : vector<8x1xf32> to vector<8x32xf32>
    %197 = arith.mulf %192, %196 : vector<8x32xf32>
    %198 = vector.broadcast %178 : vector<1x32xf32> to vector<8x32xf32>
    %199 = arith.mulf %197, %198 : vector<8x32xf32>
    %200 = vector.broadcast %179 : vector<1x32xf32> to vector<8x32xf32>
    %201 = arith.addf %199, %200 : vector<8x32xf32>
    %c0_148 = arith.constant 0 : index
    %c0_149 = arith.constant 0 : index
    %c0_150 = arith.constant 0 : index
    %202 = vector.load %arg18[%c0_148, %c0_149, %c0_150] : memref<1x8x32xf32, #tpu.memory_space<vmem>>, vector<1x8x32xf32>
    %203 = vector.shape_cast %202 : vector<1x8x32xf32> to vector<8x32xf32>
    %204 = vector.shape_cast %201 : vector<8x32xf32> to vector<1x8x32xf32>
    tpu.vector_store %arg18[%c0_148, %c0_149, %c0_150], %204 {strides = array<i32>} : memref<1x8x32xf32, #tpu.memory_space<vmem>>, vector<1x8x32xf32>,
    return
  }
  func.func @transform_0(%arg0: i32, %arg1: i32) -> (i32, i32, i32) {
    %c0_i32 = arith.constant 0 : i32
    %c0_i32_0 = arith.constant 0 : i32
    %c0_i32_1 = arith.constant 0 : i32
    return %arg0, %c0_i32, %c0_i32_0 : i32, i32, i32
  }
  func.func @transform_1(%arg0: i32, %arg1: i32) -> (i32, i32, i32) {
    %c0_i32 = arith.constant 0 : i32
    %c0_i32_0 = arith.constant 0 : i32
    %c0_i32_1 = arith.constant 0 : i32
    return %arg1, %c0_i32, %c0_i32_0 : i32, i32, i32
  }
  func.func @transform_2(%arg0: i32, %arg1: i32) -> (i32, i32, i32) {
    %c0_i32 = arith.constant 0 : i32
    %c0_i32_0 = arith.constant 0 : i32
    %c0_i32_1 = arith.constant 0 : i32
    return %arg1, %c0_i32, %c0_i32_0 : i32, i32, i32
  }
  func.func @transform_3(%arg0: i32, %arg1: i32) -> (i32, i32, i32) {
    %c0_i32 = arith.constant 0 : i32
    %c0_i32_0 = arith.constant 0 : i32
    %c0_i32_1 = arith.constant 0 : i32
    return %arg1, %c0_i32, %c0_i32_0 : i32, i32, i32
  }
  func.func @transform_4(%arg0: i32, %arg1: i32) -> (i32, i32, i32) {
    %c0_i32 = arith.constant 0 : i32
    %c0_i32_0 = arith.constant 0 : i32
    %c0_i32_1 = arith.constant 0 : i32
    return %arg1, %c0_i32, %c0_i32_0 : i32, i32, i32
  }
  func.func @transform_5(%arg0: i32, %arg1: i32) -> (i32, i32, i32) {
    %c0_i32 = arith.constant 0 : i32
    %c0_i32_0 = arith.constant 0 : i32
    %c0_i32_1 = arith.constant 0 : i32
    return %arg1, %c0_i32, %c0_i32_0 : i32, i32, i32
  }
  func.func @transform_6(%arg0: i32, %arg1: i32) -> (i32, i32, i32) {
    %c0_i32 = arith.constant 0 : i32
    %c0_i32_0 = arith.constant 0 : i32
    %c0_i32_1 = arith.constant 0 : i32
    return %arg1, %c0_i32, %c0_i32_0 : i32, i32, i32
  }
  func.func @transform_7(%arg0: i32, %arg1: i32) -> (i32, i32, i32) {
    %c0_i32 = arith.constant 0 : i32
    %c0_i32_0 = arith.constant 0 : i32
    %c0_i32_1 = arith.constant 0 : i32
    return %arg1, %c0_i32, %c0_i32_0 : i32, i32, i32
  }
  func.func @transform_8(%arg0: i32, %arg1: i32) -> (i32, i32, i32) {
    %c0_i32 = arith.constant 0 : i32
    %c0_i32_0 = arith.constant 0 : i32
    %c0_i32_1 = arith.constant 0 : i32
    return %arg1, %c0_i32, %c0_i32_0 : i32, i32, i32
  }
  func.func @transform_9(%arg0: i32, %arg1: i32) -> (i32, i32, i32) {
    %c0_i32 = arith.constant 0 : i32
    %c0_i32_0 = arith.constant 0 : i32
    %c0_i32_1 = arith.constant 0 : i32
    return %arg1, %c0_i32, %c0_i32_0 : i32, i32, i32
  }
  func.func @transform_10(%arg0: i32, %arg1: i32) -> (i32, i32, i32) {
    %c0_i32 = arith.constant 0 : i32
    %c0_i32_0 = arith.constant 0 : i32
    %c0_i32_1 = arith.constant 0 : i32
    return %arg1, %c0_i32, %c0_i32_0 : i32, i32, i32
  }
  func.func @transform_11(%arg0: i32, %arg1: i32) -> (i32, i32, i32) {
    %c0_i32 = arith.constant 0 : i32
    %c0_i32_0 = arith.constant 0 : i32
    %c0_i32_1 = arith.constant 0 : i32
    return %arg1, %c0_i32, %c0_i32_0 : i32, i32, i32
  }
  func.func @transform_12(%arg0: i32, %arg1: i32) -> (i32, i32, i32) {
    %c0_i32 = arith.constant 0 : i32
    %c0_i32_0 = arith.constant 0 : i32
    %c0_i32_1 = arith.constant 0 : i32
    return %arg1, %c0_i32, %c0_i32_0 : i32, i32, i32
  }
  func.func @transform_13(%arg0: i32, %arg1: i32) -> (i32, i32, i32) {
    %c0_i32 = arith.constant 0 : i32
    %c0_i32_0 = arith.constant 0 : i32
    %c0_i32_1 = arith.constant 0 : i32
    return %arg1, %c0_i32, %c0_i32_0 : i32, i32, i32
  }
  func.func @transform_14(%arg0: i32, %arg1: i32) -> (i32, i32) {
    %c0_i32 = arith.constant 0 : i32
    %c0_i32_0 = arith.constant 0 : i32
    %c0_i32_1 = arith.constant 0 : i32
    return %c0_i32, %c0_i32_0 : i32, i32
  }
  func.func @transform_15(%arg0: i32, %arg1: i32) -> (i32, i32) {
    %c0_i32 = arith.constant 0 : i32
    %c0_i32_0 = arith.constant 0 : i32
    %c0_i32_1 = arith.constant 0 : i32
    return %c0_i32, %c0_i32_0 : i32, i32
  }
  func.func @transform_16(%arg0: i32, %arg1: i32) -> (i32, i32, i32) {
    %c0_i32 = arith.constant 0 : i32
    %c0_i32_0 = arith.constant 0 : i32
    %c0_i32_1 = arith.constant 0 : i32
    return %arg0, %c0_i32, %c0_i32_0 : i32, i32, i32
  }
}

</mosaic_0001>

<bundles_post_ra>
// kernel: tpu_custom_call.1
= control target key start
LH: loop header
LB: loop body
LE: loop exit
PB: predicated region body
PF: predicated region fallthrough
CT: control target
= control target key end

     0   :  { %s3455_s0 = inlined_call_operand.vmem [shape: f32[2,8,32], index: 0, kind: input, shape index: {}]   ;;  %s3456_s1 = inlined_call_operand.vmem [shape: f32[2,1,32], index: 1, kind: input, shape index: {}]   ;;  %s3457_s2 = inlined_call_operand.vmem [shape: f32[2,1,32], index: 2, kind: input, shape index: {}]   ;;  %s3458_s3 = inlined_call_operand.vmem [shape: f32[2,32,128], index: 3, kind: input, shape index: {}]   ;;  %s3459_s4 = inlined_call_operand.vmem [shape: f32[2,1,128], index: 4, kind: input, shape index: {}]   ;;  %s3460_s5 = inlined_call_operand.vmem [shape: f32[2,5,64], index: 5, kind: input, shape index: {}]   ;;  %s3461_s6 = inlined_call_operand.vmem [shape: f32[2,1,64], index: 6, kind: input, shape index: {}]   ;;  %s3462_s7 = inlined_call_operand.vmem [shape: f32[2,64,34], index: 7, kind: input, shape index: {}]   ;;  %s3463_s8 = inlined_call_operand.vmem [shape: f32[2,1,34], index: 8, kind: input, shape index: {}]   ;;  %s3464_s9 = inlined_call_operand.vmem [shape: f32[2,2,64], index: 9, kind: input, shape index: {}]   ;;  %s3465_s10 = inlined_call_operand.vmem [shape: f32[2,1,64], index: 10, kind: input, shape index: {}]   ;;  %s3466_s11 = inlined_call_operand.vmem [shape: f32[2,16,64], index: 11, kind: input, shape index: {}]   ;;  %s3467_s12 = inlined_call_operand.vmem [shape: f32[2,64,32], index: 12, kind: input, shape index: {}]   ;;  %s3468_s13 = inlined_call_operand.vmem [shape: f32[2,1,32], index: 13, kind: input, shape index: {}]   ;;  %s3469_s14 = inlined_call_operand.vmem [shape: f32[1,32], index: 14, kind: input, shape index: {}]   ;;  %s3470_s15 = inlined_call_operand.vmem [shape: f32[1,32], index: 15, kind: input, shape index: {}]   ;;  %s3471_s16 = inlined_call_operand.hbm [shape: f32[2,8,32], index: 16, kind: output, shape index: {}]  }
   0x1   :  { %3487 = sst [smem:[#allocation22_spill]] %s3455_s0 }
   0x2   :  { %3488 = sst [smem:[#allocation23_spill]] %s3457_s2 }
   0x3   :  { %3489 = sst [smem:[#allocation24_spill]] %s3458_s3 }
   0x4   :  { %3490 = sst [smem:[#allocation25_spill]] %s3460_s5 }
   0x5   :  { %3491 = sst [smem:[#allocation26_spill]] %s3462_s7 }
   0x6   :  { %3492 = sst [smem:[#allocation27_spill]] %s3468_s13 }
   0x7   :  { %3493 = sst [smem:[#allocation28_spill]] %s3469_s14 }
   0x8   :  { %3494 = sst [smem:[#allocation29_spill]] %s3470_s15 }
   0x9   :  { %3495 = sst [smem:[#allocation30_spill]] %s3471_s16 }
   0xa   :  { %21 = vsyncpa [#allocation7], 0 }
   0xb   :  { %23 = vsyncpa [#allocation7 + $0x1], 0  ;;  %s2849_s21 = smov 0   ;;  %s2851_s22 = smov 0  }
   0xc   :  { %s2853_s23 = smov 0   ;;  %s2855_s24 = smov 0  }
   0xd   :  { %s2857_s25 = smov 0   ;;  %s2859_s26 = smov 0  }
   0xe   :  { %s2861_s27 = smov 0   ;;  %s2863_s28 = smov 0  }
   0xf LB: > { %3496 = sst [smem:[#allocation9_spill]] %s2728_s21  ;;  %s2386_s29 = sadd.s32 4294967295, %s2756_s28   ;;  %s2756_s28 = sphi %s2863_s28, %s29_s28   ;;  %s2752_s27 = sphi %s2861_s27, %s3542_s27   ;;  %s2748_s26 = sphi %s2859_s26, %s3541_s26   ;;  %s2744_s25 = sphi %s2857_s25, %s3540_s25   ;;  %s2740_s24 = sphi %s2855_s24, %s3539_s24   ;;  %s2736_s23 = sphi %s2853_s23, %s3538_s23   ;;  %s2732_s22 = sphi %s2851_s22, %s3537_s22   ;;  %s2728_s21 = sphi %s2849_s21, %s3536_s21  }
  0x10   : > { %3497 = sst [smem:[#allocation10_spill]] %s2732_s22  ;;  %s2387_s30 = sadd.s32 4294967294, %s2756_s28  }
  0x11   : > { %3498 = sst [smem:[#allocation11_spill]] %s2736_s23  ;;  %s38_s0 = sadd.s32 1, %s2748_s26 }
  0x12   : > { %3499 = sst [smem:[#allocation12_spill]] %s2740_s24  ;;  %p39_p0 = scmp.ge.s32.totalorder %s38_s0, 2 }
  0x13   : > { %3500 = sst [smem:[#allocation13_spill]] %s2744_s25  ;;  %s41_s17 = sadd.s32 1, %s2752_s27 }
  0x14   : > { %3501 = sst [smem:[#allocation14_spill]] %s2748_s26  ;;  %p464_p1 = scmp.ne.s32.totalorder %s2736_s23, %s2732_s22 }
  0x15   : > { %3502 = sst [smem:[#allocation15_spill]] %s2752_s27  ;;  %p465_p2 = scmp.eq.s32.totalorder %s2386_s29, 3 }
  0x16   : > { %3503 = sst [smem:[#allocation16_spill]] %s2756_s28  ;;  %s3544_s0 = smov (%p39_p0, %s38_s0), 0 }
  0x17   : > { %3504 = sst [smem:[#allocation17_spill]] %s3544_s0  ;;  %s3546_s17 = smov (!%p39_p0, %s41_s17), %s2752_s27 }
  0x18   : > { %p2898_p3 = por %p465_p2, %p464_p1  ;;  %p470_p4 = scmp.ne.s32.totalorder %s2732_s22, %s2728_s21 }
  0x19   : > { %p43_p5 = scmp.ge.s32.totalorder %s3546_s17, 2  ;;  %p471_p6 = scmp.eq.s32.totalorder %s2387_s30, 3 }
  0x1a   : > { %s3505_s18 = scalar_select %p2898_p3, 1, 0 }
  0x1b   : > { %p2390_p7 = scmp.ge.s32.totalorder %s2756_s28, 1  ;;  %p590_p8 = scmp.lt.s32.totalorder %s2756_s28, 5 }
  0x1c   : > { %3506 = sst [smem:[#allocation18_spill]] %s3505_s18  ;;  %s3548_s17 = smov (%p43_p5, %s3546_s17), 0 }
  0x1d   : > { %3507 = sst [smem:[#allocation19_spill]] %s3548_s17  ;;  %p2908_p9 = por %p471_p6, %p470_p4 }
  0x1e   : > { %p591_p10 = pnand %p2390_p7, %p590_p8  ;;  %s451_s20 = ssub.s32 %s2752_s27, %s3548_s17 }
  0x1f   : > { %s3508_s19 = scalar_select %p2908_p9, 1, 0 }
  0x20   : > { %s454_s29 = sadd.s32 1, %s2736_s23  ;;  %p452_p11 = scmp.eq.s32.totalorder %s451_s20, 0 }
  0x21   : > { %3509 = sst [smem:[#allocation20_spill]] %s3508_s19  ;;  %594 = sbr.rel (%p591_p10) target bundleno = 1759 (0x6df), region = 84 }
  0x22   : > { %s2916_s0 = scalar_select %p452_p11, %s2736_s23, %s454_s29  }
  0x23   : > { %s3477_s30 = sand.u32 (!%p591_p10), 1, %s2732_s22   ;;  %p688_p12 = scmp.lt.s32.totalorder (!%p591_p10), %s2744_s25, 1 }
  0x24   : > { %3510 = sst [smem:[#allocation21_spill]] %s2916_s0  ;;  %s2391_s26 = sshll.u32 (!%p591_p10), %s3477_s30, 3 }
  0x25   : > { %p692_p13 = scmp.lt.s32.totalorder (!%p591_p10), %s2740_s24, 1  ;;  %s3511_s27 = sld [smem:[#allocation22_spill]] (!%p591_p10) }
  0x26   : > { %s3513_s3 = sld [smem:[#allocation24_spill]] (!%p591_p10)  ;;  %s3514_s5 = sld [smem:[#allocation25_spill]] (!%p591_p10) }
  0x27   : > { %s3515_s7 = sld [smem:[#allocation26_spill]] (!%p591_p10)  ;;  %s3517_s23 = sld [smem:[#allocation12_spill]] (!%p591_p10) }
  0x28   : > { %s689_s21 = scalar_select %p688_p12, %s2744_s25, 1 }
  0x29   : > { %s2925_s19 = scalar_select %p692_p13, %s2740_s24, 1 }
  0x2a   : > { %s2392_s20 = sshll.u32 %s689_s21, 3 }
  0x2b   : > { %s691_s30 = scalar_lea.vmem %s3511_s27, %s2392_s20  ;;  %s2424_s18 = sshll.u32 %s2925_s19, 5 }
  0x2c   : > { %s2942_s24 = scalar_lea.vmem %s3513_s3, %s2424_s18  ;;  %s2395_s27 = sshll.u32 %s2925_s19, 3 }
  0x2d   : > { %s2956_s15 = scalar_lea.vmem %s3514_s5, %s2395_s27  ;;  %s2425_s16 = sshll.u32 %s2925_s19, 6 }
  0x2e   : > { %s2962_s22 = scalar_lea.vmem %s3515_s7, %s2425_s16  ;;  %s2398_s21 = sshll.u32 %s2925_s19, 1 }
  0x2f   : > { %s2976_s28 = scalar_lea.vmem %s3464_s9, %s2398_s21  ;;  %s2426_s27 = sshll.u32 %s2925_s19, 4 }
  0x30   : > { %s2982_s2 = scalar_lea.vmem %s3466_s11, %s2426_s27  ;;  %s2987_s25 = scalar_lea.vmem %s3467_s12, %s2425_s16 }
  0x31   : > { %s3516_s3 = sld [smem:[#allocation27_spill]]  ;;  %s2993_s20 = scalar_lea.vmem [#allocation6], %s2391_s26 }
  0x32   : > { %p2403_p0 = scmp.ne.s32.totalorder %s3517_s23, 0 }
  0x33   : > { %v745_v0 = vld [vmem:[%s691_s30] sm:$0xff] (!%p2403_p0)  ;;  %vm746_vm0 = vcmask (!%p2403_p0), 261120  }
  0x34   : > { %744 = sbr.rel (%p2403_p0) target bundleno = 59 (0x3b), region = 88  ;;  %747 = vst.msk [vmem:[%s2993_s20] sm:$0xff] (!%p2403_p0), %vm746_vm0, %v745_v0 }
  0x37   : > { %s740_s17 = scalar_lea.vmem %s3516_s3, %s2925_s19 }
  0x3b PF: > { %v748_v1 = vld [vmem:[%s2993_s20] sm:$0xff]  ;;  %vm751_vm1 = vcmask 261120   ;;  %v781_v9 = vld [vmem:[%s2942_s24 + $0x8] sm:$0xff]  ;;  %v782_v10 = vld [vmem:[%s2942_s24 + $0x10] sm:$0xff]  ;;  %v2758_v11 = vmov 0.0|0.0   ;;  %vm2759_vm2 = vmmov 0   ;;  %v878_v37 = vlaneseq  ;;  %s3521_s27 = scalar_lea.vmem %s3459_s4, %s2925_s19  ;;  %s3522_s14 = scalar_lea.vmem %s3461_s6, %s2925_s19 }
  0x3c   : > { %v752_v2 = vsel %vm751_vm1, %v748_v1, 0.0  ;;  %v780_v8 = vld [vmem:[%s2942_s24] sm:$0xff]  ;;  %2507 = vmatprep.subr.bf16.mxu1 %v2758_v11  ;;  %v783_v13 = vld [vmem:[%s2942_s24 + $0x18] sm:$0xff]  ;;  %v2760_v14 = vmov 0.0   ;;  %vm864_vm3 = vcmask 517120   ;;  %s3518_s24 = scalar_lea.vmem %s3456_s1, %s2925_s19  ;;  %s3519_s16 = sld [smem:[#allocation23_spill]] }
  0x3d   : > { %753 = vadd.xlane.f32.xlu0 %v752_v2  ;;  %v2508_v12 = vpack.c.bf16 %v781_v9, %v780_v8  ;;  %2461 = vmatprep.mubr.msk.f32.mxu1 %vm2759_vm2, %v2760_v14  ;;  %865 = vst.msk [vmem:[#allocation2] sm:$0x3] %vm864_vm3, %v2760_v14  ;;  %866 = vst.msk [vmem:[#allocation2 + $0xa] sm:$0x3] %vm864_vm3, %v2760_v14  ;;  %v2511_v15 = vpack.c.bf16 %v783_v13, %v782_v10  ;;  %v2404_v20 = vld [vmem:[%s3518_s24] ss:$0 sm:$0xff]  ;;  %s3523_s3 = scalar_lea.vmem %s3463_s8, %s2925_s19  ;;  %s3524_s7 = scalar_lea.vmem %s3465_s10, %s2925_s19 }
  0x3e   : > { %2483 = vmatprep.subr.mxu0 %v2760_v14  ;;  %2485 = vmatprep.mubr.msk.f32.mxu0 %vm2759_vm2, %v2760_v14  ;;  %v919_v25 = vld [vmem:[%s2962_s22] sm:$0xff]  ;;  %v920_v26 = vld [vmem:[%s2962_s22 + $0x8] sm:$0xff]  ;;  %v921_v27 = vld [vmem:[%s2962_s22 + $0x10] sm:$0xff]  ;;  %v3043_v39 = vshrl.u32 %v878_v37, 7  ;;  %vm867_vm4 = vcmask 523264   ;;  %vm1019_vm5 = vcmask 1041408  }
  0x3f   : > { %2509 = vmatpush3.bf16.msra.mxu1 %v2508_v12  ;;  %v2514_v28 = vpack.c.bf16 %v920_v26, %v919_v25  ;;  %v922_v29 = vld [vmem:[%s2962_s22 + $0x18] sm:$0xff]  ;;  %v923_v31 = vld [vmem:[%s2962_s22 + $0x20] sm:$0xff]  ;;  %v924_v32 = vld [vmem:[%s2962_s22 + $0x28] sm:$0xff]  ;;  %vm1015_vm6 = vcmask 15360   ;;  %vm2019_vm8 = vcmask 1041409   ;;  %vm2021_vm9 = vcmask 1042434  }
  0x40   : > { %2510 = vmatprep.subr.bf16.mxu1 %v2758_v11  ;;  %v2517_v30 = vpack.c.bf16 %v922_v29, %v921_v27  ;;  %v2520_v33 = vpack.c.bf16 %v924_v32, %v923_v31  ;;  %v925_v34 = vld [vmem:[%s2962_s22 + $0x30] sm:$0xff]  ;;  %v926_v35 = vld [vmem:[%s2962_s22 + $0x38] sm:$0xff]  ;;  %v2406_v38 = vld [vmem:[%s3521_s27] ss:$0 sm:$0xff]  ;;  %v3050_v43 = vsub.s32 0, %v3043_v39  ;;  %v887_v45 = vsub.s32 1, %v3043_v39 }
  0x41   : > { %v2523_v36 = vpack.c.bf16 %v926_v35, %v925_v34  ;;  %v869_v44 = vld [vmem:[%s2956_s15] sm:$0x1f]  ;;  %v894_v47 = vsub.s32 2, %v3043_v39  ;;  %v901_v49 = vsub.s32 3, %v3043_v39  ;;  %v908_v55 = vsub.s32 4, %v3043_v39  ;;  %v2049_v34 = vld [vmem:[%s2987_s25 + $0x8] sm:$0xff] }
  0x42   : > { %s3520_s13 = scalar_lea.vmem %s3519_s16, %s2925_s19  ;;  %v881_v46 = vrot.slane %v869_v44, %v3050_v43  ;;  %v888_v48 = vrot.slane %v869_v44, %v887_v45  ;;  %v2408_v50 = vld [vmem:[%s3522_s14] ss:$0 sm:$0xff]  ;;  %v1401_v26 = vsub.s32 7, %v3043_v39  ;;  %v2050_v35 = vld [vmem:[%s2987_s25 + $0x10] sm:$0xff]  ;;  %v2051_v37 = vld [vmem:[%s2987_s25 + $0x18] sm:$0xff]  ;;  %vm2023_vm10 = vcmask 1043459  }
  0x43   : > { %2512 = vmatpush3.bf16.msra.mxu1 %v2511_v15  ;;  %v2405_v22 = vld [vmem:[%s3520_s13] ss:$0 sm:$0xff]  ;;  %v895_v54 = vrot.slane %v869_v44, %v894_v47  ;;  %v902_v59 = vrot.slane %v869_v44, %v901_v49  ;;  %v909_v63 = vrot.slane %v869_v44, %v908_v55  ;;  %vm2025_vm11 = vcmask 1044484   ;;  %s3526_s26 = sld [smem:[#allocation13_spill]]  ;;  %s3527_s19 = sld [smem:[#allocation10_spill]] }
  0x44   : > { %2513 = vmatprep.subr.bf16.mxu1 %v2758_v11  ;;  %v1007_v12 = vld [vmem:[%s2976_s28] sm:$0x3]  ;;  %s2761_s28 = smov 64   ;;  %vm2027_vm12 = vcmask 1045509   ;;  %vm2029_vm13 = vcmask 1046534   ;;  %vm2031_vm14 = vcmask 1047559  }
  0x45   : > { %2484 = vmatpush3.msk.msra.mxu0 %vm1019_vm5, %v1007_v12  ;;  %v2410_v13 = vld [vmem:[%s3523_s3] ss:$0 sm:$0xff]  ;;  %s3529_s13 = sld [smem:[#allocation28_spill]]  ;;  %s3530_s27 = sld [smem:[#allocation29_spill]] }
  0x46   : > { %2525 = vmatprep.subr.bf16.mxu0 %v2758_v11  ;;  %s2181_s0 = sshll.u32 %s2993_s20, 4  ;;  %s3531_s18 = sld [smem:[#allocation30_spill]]  ;;  %s3400_s0 = int_to_ptr.vmem [resolvable:$true] %s2181_s0 }
  0x47   : > { %s2662_s5 = scalar_lea.vmem %s3400_s0, 128 }
  0x48   : > { %p2663_p1 = scmp.ne.s32.totalorder %s3400_s0, %s2662_s5 }
  0x49   : > { %s2421_s22 = sshll.u32 %s3526_s26, 7 }
  0x4a   : > { %p2664_p2 = pnand %p2663_p1, %p2898_p3 }
  0x4c   : > { %s3398_s3 = scalar_lea.hbm %s3531_s18, %s2421_s22  ;;  %p2665_p4 = pneg %p2664_p2 }
  0xca   : > { %v754_v3 = vpop.xlane.xlu0 %753 }
  0xcb   : > { %v756_v4 = vmul.f32 0.03125, %v754_v3 }
  0xcd   : > { %v757_v5 = vsub.f32 %v748_v1, %v756_v4 }
  0xcf   : > { %v758_v6 = vmul.f32 %v757_v5, %v757_v5 }
  0xd1   : > { %v759_v7 = vsel %vm751_vm1, %v758_v6, 0.0 }
  0xd2   : > { %760 = vadd.xlane.f32.xlu0 %v759_v7 }
 0x15f   : > { %v761_v16 = vpop.xlane.xlu0 %760 }
 0x160   : > { %v762_v17 = vmul.f32 0.03125, %v761_v16 }
 0x162   : > { %v763_v18 = vadd.f32 1e-05, %v762_v17 }
 0x164   : > { %2613 = vrsqrt.f32 %v763_v18 }
 0x16e   : > { %v2614_v19 = vpop.eup %2613 }
 0x16f   : > { %v765_v21 = vmul.f32 %v2614_v19, %v757_v5 }
 0x171   : > { %v772_v23 = vmul.f32 %v2404_v20, %v765_v21  ;;  %v1377_v21 = vsub.s32 5, %v3043_v39 }
 0x173   : > { %v779_v24 = vadd.f32 %v2405_v22, %v772_v23  ;;  %v1389_v23 = vsub.s32 6, %v3043_v39 }
 0x175   : > { %2462 = vmatmul.mubr.msk.f32.vlgmr.msra.gmra.mrb[0].mxu1 %vm751_vm1, %v779_v24 }
 0x176   : > { %2480 = vmatprep.mubr.msk.f32.mxu1 %vm2759_vm2, %v2760_v14  ;;  %2515 = vmatpush3.bf16.msra.mxu1 %v2514_v28 }
 0x177   : > { %2516 = vmatprep.subr.bf16.mxu1 %v2758_v11 }
 0x17a   : > { %2518 = vmatpush3.bf16.msra.mxu1 %v2517_v30 }
 0x17b   : > { %2519 = vmatprep.subr.bf16.mxu1 %v2758_v11 }
 0x17e   : > { %2521 = vmatpush3.bf16.msra.mxu1 %v2520_v33  ;;  %v2048_v33 = vld [vmem:[%s2987_s25] sm:$0xff] }
 0x17f   : > { %2522 = vmatprep.subr.bf16.mxu1 %v2758_v11 }
 0x182   : > { %2524 = vmatpush3.bf16.msra.mxu1 %v2523_v36  ;;  %v2526_v36 = vpack.c.bf16 %v2049_v34, %v2048_v33 }
 0x248   : > { %v860_v40 = vpop.f32.mrb[0].mxu1 }
 0x249   : > { %v3045_v41 = vadd.f32 %v2406_v38, %v860_v40  ;;  %v2463_v42 = vpop.f32.mrb[1].mxu1  ;;  %v2529_v38 = vpack.c.bf16 %v2051_v37, %v2050_v35  ;;  %v2052_v40 = vld [vmem:[%s2987_s25 + $0x20] sm:$0xff] }
 0x24a   : > { %v2053_v42 = vld [vmem:[%s2987_s25 + $0x28] sm:$0xff] }
 0x24b   : > { %868 = vst.msk [vmem:[#allocation2 + $0x2] sm:$0xff] %vm867_vm4, %v3045_v41  ;;  %v2415_v28 = vmul.f32 -1.442695, %v3045_v41  ;;  %v2532_v44 = vpack.c.bf16 %v2053_v42, %v2052_v40 }
 0x252   : > { %v877_v51 = vld [vmem:[#allocation2] sm:$0xff] }
 0x253   : > { %v884_v52 = vld [vmem:[#allocation2 + $0x1] sm:$0xff]  ;;  %v882_v53 = vmul.f32 %v881_v46, %v877_v51 }
 0x254   : > { %v891_v56 = vld [vmem:[#allocation2 + $0x2] sm:$0xff]  ;;  %v889_v58 = vmul.f32 %v888_v48, %v884_v52 }
 0x255   : > { %v883_v57 = vadd.f32 %v2408_v50, %v882_v53  ;;  %v898_v60 = vld [vmem:[#allocation2 + $0x3] sm:$0xff]  ;;  %v896_v62 = vmul.f32 %v895_v54, %v891_v56 }
 0x256   : > { %v905_v0 = vld [vmem:[#allocation2 + $0x4] sm:$0xff]  ;;  %v903_v2 = vmul.f32 %v902_v59, %v898_v60  ;;  %v2762_v60 = vmov 1966171168  }
 0x257   : > { %v890_v61 = vadd.f32 %v889_v58, %v883_v57  ;;  %v910_v4 = vmul.f32 %v909_v63, %v905_v0 }
 0x259   : > { %v897_v1 = vadd.f32 %v896_v62, %v890_v61  ;;  %v1114_v61 = vunpack.c.l.s4 %v2762_v60 }
 0x25b   : > { %v904_v3 = vadd.f32 %v903_v2, %v897_v1  ;;  %v1115_v1 = vunpack.c.0.s8 %v1114_v61 }
 0x25d   : > { %v911_v5 = vadd.f32 %v910_v4, %v904_v3 }
 0x25f   : > { %v2409_v6 = vmul.f32 -1.442695, %v911_v5 }
 0x261   : > { %2615 = vpow2.f32 %v2409_v6  ;;  %v3109_v6 = vsub.s32 %v1115_v1, %v3043_v39 }
 0x26b   : > { %v2616_v7 = vpop.eup %2615 }
 0x26c   : > { %v915_v8 = vadd.f32 1.0, %v2616_v7 }
 0x26e   : > { %2617 = vrcp.f32 %v915_v8 }
 0x26f   : > { %2619 = vpow2.f32 %v2415_v28  ;;  %v1109_v28 = vld [vmem:[%s2982_s2 + $0x8] sm:$0xff] }
 0x278   : > { %v2618_v9 = vpop.eup %2617 }
 0x279   : > { %v3063_v10 = vmul.f32 %v2618_v9, %v911_v5  ;;  %v2620_v29 = vpop.eup %2619 }
 0x27a   : > { %v2039_v30 = vadd.f32 1.0, %v2620_v29 }
 0x27b   : > { %2481 = vmatmul.mubr.msk.f32.vlgmr.msra.gmra.mrb[2].mxu1 %vm867_vm4, %v3063_v10 }
 0x27c   : > { %2621 = vrcp.f32 %v2039_v30 }
 0x286   : > { %v2622_v31 = vpop.eup %2621 }
 0x287   : > { %v2042_v32 = vmul.f32 %v2622_v31, %v3045_v41  ;;  %v2054_v41 = vld [vmem:[%s2987_s25 + $0x30] sm:$0xff] }
 0x34e   : > { %v1003_v15 = vpop.f32.mrb[2].mxu1 }
 0x34f   : > { %v1004_v16 = vadd.f32 %v2410_v13, %v1003_v15  ;;  %v2482_v17 = vpop.f32.mrb[3].mxu1 }
 0x351   : > { %2486 = vmatmul.mubr.msk.f32.vlgmr.msra.gmra.mrb[0].mxu0 %vm1015_vm6, %v1004_v16  ;;  %v1330_v18 = vrot.slane %v1004_v16, %v887_v45  ;;  %v1318_v19 = vrot.slane %v1004_v16, %v3050_v43  ;;  %v1366_v20 = vrot.slane %v1004_v16, %v908_v55  ;;  %v1378_v22 = vrot.slane %v1004_v16, %v1377_v21  ;;  %v2055_v45 = vld [vmem:[%s2987_s25 + $0x38] sm:$0xff] }
 0x352   : > { %2504 = vmatprep.mubr.msk.f32.mxu0 %vm2759_vm2, %v2760_v14  ;;  %v1342_v24 = vrot.slane %v1004_v16, %v894_v47  ;;  %v1390_v25 = vrot.slane %v1004_v16, %v1389_v23  ;;  %v1402_v27 = vrot.slane %v1004_v16, %v1401_v26  ;;  %v1354_v14 = vrot.slane %v1004_v16, %v901_v49  ;;  %v2412_v47 = vld [vmem:[%s3524_s7] ss:$0 sm:$0xff]  ;;  %s2763_s7 = smov [#allocation6]  }
 0x353   : > { %1333 = vbcast.lane.b32.xlu1 %v1330_v18, 258  ;;  %1321 = vbcast.lane.b32.xlu0 %v1318_v19, 258  ;;  %v2535_v46 = vpack.c.bf16 %v2055_v45, %v2054_v41 }
 0x354   : > { %2527 = vmatpush3.bf16.msra.mxu0 %v2526_v36 }
 0x355   : > { %2528 = vmatprep.subr.bf16.mxu0 %v2758_v11 }
 0x357   : > { %1337 = vbcast.lane.b32.xlu1 %v1330_v18, 266  ;;  %1373 = vbcast.lane.b32.xlu0 %v1366_v20, 266 }
 0x358   : > { %2530 = vmatpush3.bf16.msra.mxu0 %v2529_v38 }
 0x359   : > { %2531 = vmatprep.subr.bf16.mxu0 %v2758_v11 }
 0x35b   : > { %1325 = vbcast.lane.b32.xlu1 %v1318_v19, 266  ;;  %1385 = vbcast.lane.b32.xlu0 %v1378_v22, 266 }
 0x35c   : > { %2533 = vmatpush3.bf16.msra.mxu0 %v2532_v44 }
 0x35d   : > { %2534 = vmatprep.subr.bf16.mxu0 %v2758_v11 }
 0x35f   : > { %1345 = vbcast.lane.b32.xlu1 %v1342_v24, 258  ;;  %1397 = vbcast.lane.b32.xlu0 %v1390_v25, 266 }
 0x360   : > { %2536 = vmatpush3.bf16.msra.mxu0 %v2535_v46 }
 0x363   : > { %1349 = vbcast.lane.b32.xlu1 %v1342_v24, 266  ;;  %1409 = vbcast.lane.b32.xlu0 %v1402_v27, 266 }
 0x367   : > { %1357 = vbcast.lane.b32.xlu1 %v1354_v14, 258  ;;  %1865 = vbcast.lane.b32.xlu0 %v1318_v19, 282 }
 0x36b   : > { %1361 = vbcast.lane.b32.xlu1 %v1354_v14, 266  ;;  %1873 = vbcast.lane.b32.xlu0 %v1330_v18, 282 }
 0x36f   : > { %1369 = vbcast.lane.b32.xlu1 %v1366_v20, 258  ;;  %1881 = vbcast.lane.b32.xlu0 %v1342_v24, 282 }
 0x373   : > { %1381 = vbcast.lane.b32.xlu1 %v1378_v22, 258  ;;  %1889 = vbcast.lane.b32.xlu0 %v1354_v14, 282 }
 0x377   : > { %1393 = vbcast.lane.b32.xlu1 %v1390_v25, 258  ;;  %1897 = vbcast.lane.b32.xlu0 %v1366_v20, 282 }
 0x37b   : > { %1405 = vbcast.lane.b32.xlu1 %v1402_v27, 258  ;;  %1905 = vbcast.lane.b32.xlu0 %v1378_v22, 282 }
 0x37f   : > { %1861 = vbcast.lane.b32.xlu1 %v1318_v19, 274  ;;  %1913 = vbcast.lane.b32.xlu0 %v1390_v25, 282 }
 0x383   : > { %1869 = vbcast.lane.b32.xlu1 %v1330_v18, 274  ;;  %1921 = vbcast.lane.b32.xlu0 %v1402_v27, 282 }
 0x387   : > { %1877 = vbcast.lane.b32.xlu1 %v1342_v24, 274 }
 0x38b   : > { %1885 = vbcast.lane.b32.xlu1 %v1354_v14, 274 }
 0x38f   : > { %1893 = vbcast.lane.b32.xlu1 %v1366_v20, 274 }
 0x393   : > { %1901 = vbcast.lane.b32.xlu1 %v1378_v22, 274  ;;  %v1108_v22 = vld [vmem:[%s2982_s2] sm:$0xff]  ;;  %s2666_s2 = sshll.u32 %s2763_s7, 4  ;;  %s2667_s2 = int_to_ptr.vmem [resolvable:$false] %s2666_s2 }
 0x394   : > { %s2668_s25 = scalar_lea.vmem %s2667_s2, 256  ;;  %p2669_p5 = scmp.lt.s32.totalorder %s3400_s0, %s2667_s2 }
 0x395   : > { %p2670_p6 = scmp.lt.s32.totalorder %s2668_s25, %s2662_s5 }
 0x397   : > { %1909 = vbcast.lane.b32.xlu1 %v1390_v25, 274  ;;  %p2671_p7 = por %p2670_p6, %p2669_p5 }
 0x399   : > { %p2672_p8 = pnand %p2671_p7, %p2665_p4 }
 0x39b   : > { %1917 = vbcast.lane.b32.xlu1 %v1402_v27, 274 }
 0x39f   : > { %2044 = vrot.lane.b32.xlu1 %v2042_v32, %s2761_s28  ;;  %s3532_s28 = sand.u32 1, %s3527_s19  }
 0x3a0   : > { %s2168_s23 = scalar_lea.sflag [#allocation7], %s3532_s28 }
 0x3c5   : > { %v3098_v52 = vpop.permute.xlu1 %1333  ;;  %v3117_v20 = vpop.permute.xlu0 %1321 }
 0x3c9   : > { %v3100_v55 = vpop.permute.xlu1 %1337  ;;  %v3141_v44 = vpop.permute.xlu0 %1373 }
 0x3cd   : > { %v3102_v56 = vpop.permute.xlu1 %1325 }
 0x3d1   : > { %v3104_v58 = vpop.permute.xlu1 %1345 }
 0x3d5   : > { %v3106_v62 = vpop.permute.xlu1 %1349 }
 0x3d9   : > { %v3111_v7 = vpop.permute.xlu1 %1357 }
 0x3dd   : > { %v3119_v39 = vpop.permute.xlu1 %1361 }
 0x3e1   : > { %v3143_v41 = vpop.permute.xlu1 %1369 }
 0x424   : > { %v1089_v48 = vpop.f32.mrb[0].mxu0 }
 0x425   : > { %v1090_v49 = vadd.f32 %v2412_v47, %v1089_v48  ;;  %v2487_v50 = vpop.f32.mrb[1].mxu0 }
 0x427   : > { %v1094_v51 = vand.u32 2147483647, %v1090_v49  ;;  %v1093_v5 = vmax.f32 %v1090_v49, 0.0 }
 0x429   : > { %v1095_v53 = vsub.f32 0.0, %v1094_v51 }
 0x42b   : > { %v1096_v54 = vmul.f32 1.442695, %v1095_v53 }
 0x42d   : > { %2623 = vpow2.f32 %v1096_v54 }
 0x437   : > { %v2624_v11 = vpop.eup %2623 }
 0x438   : > { %v1098_v57 = vadd.f32 1.0, %v2624_v11  ;;  %v1101_v59 = vmul.f32 -0.5, %v2624_v11  ;;  %v1104_v0 = vand.u32 2147483647, %v2624_v11 }
 0x43a   : > { %2625 = vlog2.f32 %v1098_v57  ;;  %v1102_v63 = vadd.f32 1.0, %v1101_v59  ;;  %vm1105_vm7 = vcmp.lt.f32.partialorder %v1104_v0, 0.0004427343 }
 0x43c   : > { %v1103_v4 = vmul.f32 %v2624_v11, %v1102_v63 }
 0x444   : > { %v2626_v2 = vpop.eup %2625 }
 0x445   : > { %v1100_v3 = vmul.f32 0.6931472, %v2626_v2 }
 0x447   : > { %v1106_v8 = vsel %vm1105_vm7, %v1103_v4, %v1100_v3 }
 0x448   : > { %v1107_v9 = vadd.f32 %v1106_v8, %v1093_v5 }
 0x44a   : > { %v1110_v12 = vmul.f32 %v1107_v9, %v3063_v10  ;;  %v1112_v13 = vcombine.high %v1107_v9, %v1107_v9  ;;  %v1119_v15 = vrot.slane %v1107_v9, %v3109_v6 }
 0x44c   : > { %v1126_v16 = vrot.slane %v1112_v13, %v3109_v6  ;;  %v1127_v17 = vcombine.high %v1119_v15, %v1119_v15  ;;  %v1135_v18 = vrot.slane %v1119_v15, %v3109_v6  ;;  %v1266_v19 = vcombine.high %v1110_v12, %v1110_v12  ;;  %v1382_v13 = vpop.permute.xlu1 %1381 }
 0x44d   : > { %v3122_v21 = vrot.slane %v1110_v12, %v3109_v6  ;;  %v3146_v12 = vpop.permute.xlu0 %1385 }
 0x44e   : > { %v1128_v23 = vcombine.high %v1126_v16, %v1126_v16  ;;  %v1142_v10 = vrot.slane %v1126_v16, %v3109_v6  ;;  %v1149_v24 = vrot.slane %v1127_v17, %v3109_v6  ;;  %v1157_v25 = vcombine.high %v1135_v18, %v1135_v18 }
 0x44f   : > { %v1164_v26 = vrot.slane %v1135_v18, %v3050_v43  ;;  %v1280_v27 = vrot.slane %v1266_v19, %v3109_v6  ;;  %v1281_v14 = vcombine.high %v3122_v21, %v3122_v21  ;;  %v1289_v36 = vrot.slane %v3122_v21, %v3109_v6 }
 0x450   : > { %v1156_v29 = vrot.slane %v1128_v23, %v3109_v6  ;;  %v1158_v30 = vcombine.high %v1142_v10, %v1142_v10  ;;  %v1159_v31 = vcombine.high %v1149_v24, %v1149_v24  ;;  %v1168_v32 = vrot.slane %v1149_v24, %v3050_v43 }
 0x451   : > { %v1172_v33 = vrot.slane %v1157_v25, %v3050_v43  ;;  %v1180_v34 = vrot.slane %v1142_v10, %v3050_v43  ;;  %v1201_v35 = vmul.f32 %v1164_v26, %v1108_v22  ;;  %v1202_v45 = vmul.f32 %v1164_v26, %v1109_v28 }
 0x452   : > { %v1160_v37 = vcombine.high %v1156_v29, %v1156_v29  ;;  %v1176_v38 = vrot.slane %v1159_v31, %v3050_v43  ;;  %v1184_v40 = vrot.slane %v1156_v29, %v3050_v43  ;;  %v1188_v42 = vrot.slane %v1158_v30, %v3050_v43 }
 0x453   : > { %v1203_v46 = vmul.f32 %v1168_v32, %v1108_v22  ;;  %v1204_v47 = vmul.f32 %v1168_v32, %v1109_v28  ;;  %v1205_v48 = vmul.f32 %v1172_v33, %v1108_v22  ;;  %v1206_v50 = vmul.f32 %v1172_v33, %v1109_v28 }
 0x454   : > { %v1192_v49 = vrot.slane %v1160_v37, %v3050_v43  ;;  %v1207_v51 = vmul.f32 %v1176_v38, %v1108_v22  ;;  %v1208_v53 = vmul.f32 %v1176_v38, %v1109_v28  ;;  %v1209_v54 = vmul.f32 %v1180_v34, %v1108_v22 }
 0x455   : > { %v1210_v11 = vmul.f32 %v1180_v34, %v1109_v28  ;;  %v1211_v57 = vmul.f32 %v1184_v40, %v1108_v22  ;;  %v1212_v59 = vmul.f32 %v1184_v40, %v1109_v28  ;;  %v1213_v60 = vmul.f32 %v1188_v42, %v1108_v22  ;;  %v1398_v34 = vpop.permute.xlu0 %1397 }
 0x456   : > { %v1214_v61 = vmul.f32 %v1188_v42, %v1109_v28  ;;  %v1215_v63 = vmul.f32 %v1192_v49, %v1108_v22  ;;  %v1217_v0 = vmul.f32 1.442695, %v1201_v35  ;;  %v1216_v1 = vmul.f32 %v1192_v49, %v1109_v28  ;;  %v1394_v35 = vpop.permute.xlu1 %1393 }
 0x457   : > { %v1219_v2 = vmul.f32 1.442695, %v1202_v45  ;;  %v1221_v3 = vmul.f32 1.442695, %v1203_v46  ;;  %v1223_v4 = vmul.f32 1.442695, %v1204_v47  ;;  %v1282_v9 = vcombine.high %v1280_v27, %v1280_v27 }
 0x458   : > { %2627 = vpow2.f32 %v1217_v0  ;;  %v1225_v5 = vmul.f32 1.442695, %v1205_v48  ;;  %v1227_v8 = vmul.f32 1.442695, %v1206_v50  ;;  %v1229_v15 = vmul.f32 1.442695, %v1207_v51 }
 0x459   : > { %2629 = vpow2.f32 %v1219_v2  ;;  %v1231_v16 = vmul.f32 1.442695, %v1208_v53  ;;  %v1233_v17 = vmul.f32 1.442695, %v1209_v54  ;;  %v1235_v18 = vmul.f32 1.442695, %v1210_v11 }
 0x45a   : > { %2631 = vpow2.f32 %v1221_v3  ;;  %v1237_v19 = vmul.f32 1.442695, %v1211_v57  ;;  %v1239_v21 = vmul.f32 1.442695, %v1212_v59  ;;  %v1241_v22 = vmul.f32 1.442695, %v1213_v60 }
 0x45b   : > { %2633 = vpow2.f32 %v1223_v4  ;;  %v1243_v23 = vmul.f32 1.442695, %v1214_v61  ;;  %v1245_v10 = vmul.f32 1.442695, %v1215_v63  ;;  %v1296_v24 = vrot.slane %v1280_v27, %v3109_v6 }
 0x45c   : > { %2635 = vpow2.f32 %v1225_v5  ;;  %v1303_v25 = vrot.slane %v1281_v14, %v3109_v6  ;;  %v1310_v26 = vrot.slane %v1282_v9, %v3109_v6  ;;  %v1247_v28 = vmul.f32 1.442695, %v1216_v1 }
 0x45d   : > { %2637 = vpow2.f32 %v1227_v8  ;;  %v1311_v29 = vcombine.high %v1289_v36, %v1289_v36  ;;  %v1414_v30 = vrot.slane %v1289_v36, %v3050_v43  ;;  %v1312_v31 = vcombine.high %v1296_v24, %v1296_v24 }
 0x45e   : > { %2639 = vpow2.f32 %v1229_v15  ;;  %v1313_v32 = vcombine.high %v1303_v25, %v1303_v25  ;;  %v1314_v33 = vcombine.high %v1310_v26, %v1310_v26  ;;  %v1418_v37 = vrot.slane %v1303_v25, %v3050_v43 }
 0x45f   : > { %2641 = vpow2.f32 %v1231_v16  ;;  %v1422_v27 = vrot.slane %v1311_v29, %v3050_v43  ;;  %v1430_v14 = vrot.slane %v1296_v24, %v3050_v43  ;;  %v1434_v38 = vrot.slane %v1310_v26, %v3050_v43 }
 0x460   : > { %2643 = vpow2.f32 %v1233_v17  ;;  %v1426_v6 = vrot.slane %v1313_v32, %v3050_v43  ;;  %v1438_v36 = vrot.slane %v1312_v31, %v3050_v43  ;;  %v1442_v40 = vrot.slane %v1314_v33, %v3050_v43 }
 0x461   : > { %2645 = vpow2.f32 %v1235_v18  ;;  %v1451_v42 = vmul.f32 %v1414_v30, %v3117_v20  ;;  %v1452_v45 = vmul.f32 %v1414_v30, %v3102_v56  ;;  %v1453_v47 = vmul.f32 %v1418_v37, %v3098_v52 }
 0x462   : > { %v2628_v46 = vpop.eup %2627  ;;  %2647 = vpow2.f32 %v1237_v19  ;;  %v1454_v48 = vmul.f32 %v1418_v37, %v3100_v55  ;;  %v1455_v49 = vmul.f32 %v1422_v27, %v3104_v58  ;;  %v1456_v51 = vmul.f32 %v1422_v27, %v3106_v62 }
 0x463   : > { %v2630_v50 = vpop.eup %2629  ;;  %2649 = vpow2.f32 %v1239_v21  ;;  %1249 = vst.msk [vmem:[#allocation3] sm:$0xff] %vm867_vm4, %v2628_v46  ;;  %v1457_v43 = vmul.f32 %v1426_v6, %v3111_v7  ;;  %v1458_v20 = vmul.f32 %v1426_v6, %v3119_v39  ;;  %1467 = vst.msk [vmem:[#allocation4] sm:$0xff] %vm867_vm4, %v1451_v42  ;;  %v1459_v52 = vmul.f32 %v1430_v14, %v3143_v41  ;;  %v1410_v7 = vpop.permute.xlu0 %1409 }
 0x464   : > { %1468 = vst.msk [vmem:[#allocation4 + $0x8] sm:$0xff] %vm867_vm4, %v1452_v45  ;;  %v2632_v56 = vpop.eup %2631  ;;  %2651 = vpow2.f32 %v1241_v22  ;;  %1250 = vst.msk [vmem:[#allocation3 + $0x8] sm:$0xff] %vm867_vm4, %v2630_v50  ;;  %v1460_v55 = vmul.f32 %v1430_v14, %v3141_v44  ;;  %v1461_v58 = vmul.f32 %v1434_v38, %v1382_v13  ;;  %v1406_v39 = vpop.permute.xlu1 %1405  ;;  %v1462_v53 = vmul.f32 %v1434_v38, %v3146_v12 }
 0x465   : > { %1469 = vst.msk [vmem:[#allocation4 + $0x10] sm:$0xff] %vm867_vm4, %v1453_v47  ;;  %1470 = vst.msk [vmem:[#allocation4 + $0x18] sm:$0xff] %vm867_vm4, %v1454_v48  ;;  %v2634_v62 = vpop.eup %2633  ;;  %2653 = vpow2.f32 %v1243_v23  ;;  %v1463_v54 = vmul.f32 %v1438_v36, %v1394_v35  ;;  %v1464_v11 = vmul.f32 %v1438_v36, %v1398_v34  ;;  %v1465_v41 = vmul.f32 %v1442_v40, %v1406_v39 }
 0x466   : > { %1471 = vst.msk [vmem:[#allocation4 + $0x20] sm:$0xff] %vm867_vm4, %v1455_v49  ;;  %1251 = vst.msk [vmem:[#allocation3 + $0x10] sm:$0xff] %vm867_vm4, %v2632_v56  ;;  %v2636_v44 = vpop.eup %2635  ;;  %2655 = vpow2.f32 %v1245_v10  ;;  %v1466_v57 = vmul.f32 %v1442_v40, %v1410_v7 }
 0x467   : > { %1472 = vst.msk [vmem:[#allocation4 + $0x28] sm:$0xff] %vm867_vm4, %v1456_v51  ;;  %1473 = vst.msk [vmem:[#allocation4 + $0x30] sm:$0xff] %vm867_vm4, %v1457_v43  ;;  %v2638_v59 = vpop.eup %2637  ;;  %2657 = vpow2.f32 %v1247_v28  ;;  %v1866_v28 = vpop.permute.xlu0 %1865 }
 0x468   : > { %1474 = vst.msk [vmem:[#allocation4 + $0x38] sm:$0xff] %vm867_vm4, %v1458_v20  ;;  %1252 = vst.msk [vmem:[#allocation3 + $0x18] sm:$0xff] %vm867_vm4, %v2634_v62  ;;  %v2640_v60 = vpop.eup %2639  ;;  %v1862_v21 = vpop.permute.xlu1 %1861 }
 0x469   : > { %1475 = vst.msk [vmem:[#allocation4 + $0x40] sm:$0xff] %vm867_vm4, %v1459_v52  ;;  %1476 = vst.msk [vmem:[#allocation4 + $0x48] sm:$0xff] %vm867_vm4, %v1460_v55  ;;  %v2642_v61 = vpop.eup %2641 }
 0x46a   : > { %1477 = vst.msk [vmem:[#allocation4 + $0x50] sm:$0xff] %vm867_vm4, %v1461_v58  ;;  %1253 = vst.msk [vmem:[#allocation3 + $0x20] sm:$0xff] %vm867_vm4, %v2636_v44  ;;  %v2644_v63 = vpop.eup %2643  ;;  %v3194_v0 = vld [vmem:[#allocation3] sm:$0xff] }
 0x46b   : > { %1478 = vst.msk [vmem:[#allocation4 + $0x58] sm:$0xff] %vm867_vm4, %v1462_v53  ;;  %1479 = vst.msk [vmem:[#allocation4 + $0x60] sm:$0xff] %vm867_vm4, %v1463_v54  ;;  %v2646_v1 = vpop.eup %2645  ;;  %v3197_v2 = vld [vmem:[#allocation3 + $0x8] sm:$0xff]  ;;  %v1811_v3 = vmul.f32 0.0, %v3194_v0  ;;  %v3201_v8 = vld [vmem:[#allocation4] sm:$0xff] }
 0x46c   : > { %1480 = vst.msk [vmem:[#allocation4 + $0x68] sm:$0xff] %vm867_vm4, %v1464_v11  ;;  %1254 = vst.msk [vmem:[#allocation3 + $0x28] sm:$0xff] %vm867_vm4, %v2638_v59  ;;  %v2648_v4 = vpop.eup %2647  ;;  %v1812_v9 = vmul.f32 0.0, %v3197_v2  ;;  %v3205_v15 = vld [vmem:[#allocation4 + $0x8] sm:$0xff]  ;;  %v1514_v23 = vld [vmem:[#allocation4 + $0x10] sm:$0xff] }
 0x46d   : > { %1481 = vst.msk [vmem:[#allocation4 + $0x70] sm:$0xff] %vm867_vm4, %v1465_v41  ;;  %1482 = vst.msk [vmem:[#allocation4 + $0x78] sm:$0xff] %vm867_vm4, %v1466_v57  ;;  %v1484_v5 = vld [vmem:[#allocation3 + $0x10] sm:$0xff]  ;;  %v2650_v12 = vpop.eup %2649  ;;  %v1843_v18 = vadd.f32 %v1811_v3, %v3201_v8  ;;  %v1515_v30 = vld [vmem:[#allocation4 + $0x18] sm:$0xff] }
 0x46e   : > { %1255 = vst.msk [vmem:[#allocation3 + $0x30] sm:$0xff] %vm867_vm4, %v2640_v60  ;;  %1256 = vst.msk [vmem:[#allocation3 + $0x38] sm:$0xff] %vm867_vm4, %v2642_v61  ;;  %v1541_v16 = vmul.f32 %v3201_v8, %v1484_v5  ;;  %v1583_v17 = vmul.f32 %v3194_v0, %v1484_v5  ;;  %v2652_v19 = vpop.eup %2651  ;;  %v1844_v25 = vadd.f32 %v1812_v9, %v3205_v15  ;;  %v1516_v27 = vld [vmem:[#allocation4 + $0x20] sm:$0xff]  ;;  %v1517_v45 = vld [vmem:[#allocation4 + $0x28] sm:$0xff] }
 0x46f   : > { %1257 = vst.msk [vmem:[#allocation3 + $0x40] sm:$0xff] %vm867_vm4, %v2644_v63  ;;  %1258 = vst.msk [vmem:[#allocation3 + $0x48] sm:$0xff] %vm867_vm4, %v2646_v1  ;;  %v1485_v13 = vld [vmem:[#allocation3 + $0x18] sm:$0xff]  ;;  %v2654_v26 = vpop.eup %2653  ;;  %v1923_v34 = vmul.f32 %v1862_v21, %v1843_v18  ;;  %v1518_v50 = vld [vmem:[#allocation4 + $0x30] sm:$0xff] }
 0x470   : > { %1259 = vst.msk [vmem:[#allocation3 + $0x50] sm:$0xff] %vm867_vm4, %v2648_v4  ;;  %1260 = vst.msk [vmem:[#allocation3 + $0x58] sm:$0xff] %vm867_vm4, %v2650_v12  ;;  %v1542_v10 = vmul.f32 %v3205_v15, %v1485_v13  ;;  %v1584_v24 = vmul.f32 %v3197_v2, %v1485_v13  ;;  %v1555_v32 = vadd.f32 %v1541_v16, %v1514_v23  ;;  %v2656_v35 = vpop.eup %2655  ;;  %v1519_v55 = vld [vmem:[#allocation4 + $0x38] sm:$0xff]  ;;  %v1520_v54 = vld [vmem:[#allocation4 + $0x40] sm:$0xff]  ;;  %v3232_v4 = vpop.permute.xlu1 %1869 }
 0x471   : > { %v1486_v22 = vld [vmem:[#allocation3 + $0x20] sm:$0xff]  ;;  %1261 = vst.msk [vmem:[#allocation3 + $0x60] sm:$0xff] %vm867_vm4, %v2652_v19  ;;  %1597 = vst.msk [vmem:[#allocation3 + $0x10] sm:$0xff] %vm867_vm4, %v1583_v17  ;;  %v1924_v36 = vmul.f32 %v1866_v28, %v1844_v25  ;;  %v2658_v40 = vpop.eup %2657  ;;  %v1939_v56 = vsel %vm867_vm4, %v1923_v34, 0.0  ;;  %v1521_v11 = vld [vmem:[#allocation4 + $0x48] sm:$0xff]  ;;  %v3240_v19 = vpop.permute.xlu0 %1873 }
 0x472   : > { %v1543_v31 = vmul.f32 %v1514_v23, %v1486_v22  ;;  %v1585_v33 = vmul.f32 %v1486_v22, %v1484_v5  ;;  %1262 = vst.msk [vmem:[#allocation3 + $0x68] sm:$0xff] %vm867_vm4, %v2654_v26  ;;  %v1556_v6 = vadd.f32 %v1542_v10, %v1515_v30  ;;  %1598 = vst.msk [vmem:[#allocation3 + $0x18] sm:$0xff] %vm867_vm4, %v1584_v24  ;;  %v1522_v60 = vld [vmem:[#allocation4 + $0x50] sm:$0xff]  ;;  %v1523_v61 = vld [vmem:[#allocation4 + $0x58] sm:$0xff] }
 0x473   : > { %v1487_v29 = vld [vmem:[#allocation3 + $0x28] sm:$0xff]  ;;  %1263 = vst.msk [vmem:[#allocation3 + $0x70] sm:$0xff] %vm867_vm4, %v2656_v35  ;;  %1569 = vst.msk [vmem:[#allocation4 + $0x10] sm:$0xff] %vm867_vm4, %v1555_v32  ;;  %v1940_v39 = vsel %vm867_vm4, %v1924_v36, 0.0  ;;  %v1524_v9 = vld [vmem:[#allocation4 + $0x60] sm:$0xff] }
 0x474   : > { %v1544_v14 = vmul.f32 %v1515_v30, %v1487_v29  ;;  %v1586_v38 = vmul.f32 %v1487_v29, %v1485_v13  ;;  %v1557_v47 = vadd.f32 %v1543_v31, %v1516_v27  ;;  %1599 = vst.msk [vmem:[#allocation3 + $0x20] sm:$0xff] %vm867_vm4, %v1585_v33  ;;  %1264 = vst.msk [vmem:[#allocation3 + $0x78] sm:$0xff] %vm867_vm4, %v2658_v40  ;;  %v1539_v40 = vld [vmem:[#allocation4 + $0x70] sm:$0xff] }
 0x475   : > { %v1488_v37 = vld [vmem:[#allocation3 + $0x30] sm:$0xff]  ;;  %v1489_v42 = vld [vmem:[#allocation3 + $0x38] sm:$0xff]  ;;  %1570 = vst.msk [vmem:[#allocation4 + $0x18] sm:$0xff] %vm867_vm4, %v1556_v6  ;;  %v3238_v18 = vadd.f32 %v1940_v39, %v1939_v56 }
 0x476   : > { %v1545_v46 = vmul.f32 %v1516_v27, %v1488_v37  ;;  %v1587_v48 = vmul.f32 %v1488_v37, %v1486_v22  ;;  %v1490_v49 = vld [vmem:[#allocation3 + $0x40] sm:$0xff]  ;;  %v1546_v51 = vmul.f32 %v1517_v45, %v1489_v42  ;;  %v1558_v43 = vadd.f32 %v1544_v14, %v1517_v45  ;;  %1600 = vst.msk [vmem:[#allocation3 + $0x28] sm:$0xff] %vm867_vm4, %v1586_v38  ;;  %v1491_v52 = vld [vmem:[#allocation3 + $0x48] sm:$0xff] }
 0x477   : > { %v1588_v20 = vmul.f32 %v1489_v42, %v1487_v29  ;;  %v1547_v58 = vmul.f32 %v1518_v50, %v1490_v49  ;;  %1571 = vst.msk [vmem:[#allocation4 + $0x20] sm:$0xff] %vm867_vm4, %v1557_v47  ;;  %v1589_v7 = vmul.f32 %v1490_v49, %v1488_v37  ;;  %v1492_v53 = vld [vmem:[#allocation3 + $0x50] sm:$0xff]  ;;  %v1548_v44 = vmul.f32 %v1519_v55, %v1491_v52  ;;  %v1493_v59 = vld [vmem:[#allocation3 + $0x58] sm:$0xff]  ;;  %v1525_v22 = vld [vmem:[#allocation4 + $0x68] sm:$0xff] }
 0x478   : > { %v1559_v62 = vadd.f32 %v1545_v46, %v1518_v50  ;;  %1601 = vst.msk [vmem:[#allocation3 + $0x30] sm:$0xff] %vm867_vm4, %v1587_v48  ;;  %v1560_v41 = vadd.f32 %v1546_v51, %v1519_v55  ;;  %1572 = vst.msk [vmem:[#allocation4 + $0x28] sm:$0xff] %vm867_vm4, %v1558_v43  ;;  %v1590_v57 = vmul.f32 %v1491_v52, %v1489_v42  ;;  %v1494_v5 = vld [vmem:[#allocation3 + $0x60] sm:$0xff]  ;;  %v3236_v17 = vld [vmem:[#allocation3 + $0x10] sm:$0xff] }
 0x479   : > { %1602 = vst.msk [vmem:[#allocation3 + $0x38] sm:$0xff] %vm867_vm4, %v1588_v20  ;;  %v1549_v63 = vmul.f32 %v1520_v54, %v1492_v53  ;;  %v1561_v1 = vadd.f32 %v1547_v58, %v1520_v54  ;;  %v1591_v3 = vmul.f32 %v1492_v53, %v1490_v49  ;;  %1603 = vst.msk [vmem:[#allocation3 + $0x40] sm:$0xff] %vm867_vm4, %v1589_v7  ;;  %v1495_v21 = vld [vmem:[#allocation3 + $0x68] sm:$0xff]  ;;  %v3244_v25 = vld [vmem:[#allocation3 + $0x18] sm:$0xff]  ;;  %v3247_v26 = vmul.f32 0.0, %v3236_v17  ;;  %v3268_v58 = vpop.permute.xlu1 %1877 }
 0x47a   : > { %1573 = vst.msk [vmem:[#allocation4 + $0x30] sm:$0xff] %vm867_vm4, %v1559_v62  ;;  %v1550_v12 = vmul.f32 %v1521_v11, %v1493_v59  ;;  %v1562_v13 = vadd.f32 %v1548_v44, %v1521_v11  ;;  %1574 = vst.msk [vmem:[#allocation4 + $0x38] sm:$0xff] %vm867_vm4, %v1560_v41  ;;  %v1592_v16 = vmul.f32 %v1493_v59, %v1491_v52  ;;  %v1496_v28 = vld [vmem:[#allocation3 + $0x70] sm:$0xff]  ;;  %v3254_v34 = vmul.f32 0.0, %v3244_v25  ;;  %v1540_v50 = vld [vmem:[#allocation4 + $0x78] sm:$0xff]  ;;  %v3274_v44 = vpop.permute.xlu0 %1881 }
 0x47b   : > { %1604 = vst.msk [vmem:[#allocation3 + $0x48] sm:$0xff] %vm867_vm4, %v1590_v57  ;;  %v1551_v23 = vmul.f32 %v1522_v60, %v1494_v5  ;;  %v1563_v10 = vadd.f32 %v1549_v63, %v1522_v60  ;;  %1575 = vst.msk [vmem:[#allocation4 + $0x40] sm:$0xff] %vm867_vm4, %v1561_v1  ;;  %v1593_v24 = vmul.f32 %v1494_v5, %v1492_v53  ;;  %v1612_v32 = vld [vmem:[#allocation3 + $0x20] sm:$0xff]  ;;  %v3251_v33 = vld [vmem:[#allocation4 + $0x10] sm:$0xff] }
 0x47c   : > { %1605 = vst.msk [vmem:[#allocation3 + $0x50] sm:$0xff] %vm867_vm4, %v1591_v3  ;;  %v1552_v29 = vmul.f32 %v1523_v61, %v1495_v21  ;;  %v1564_v30 = vadd.f32 %v1550_v12, %v1523_v61  ;;  %1576 = vst.msk [vmem:[#allocation4 + $0x48] sm:$0xff] %vm867_vm4, %v1562_v13  ;;  %v1594_v31 = vmul.f32 %v1495_v21, %v1493_v59  ;;  %v1497_v35 = vld [vmem:[#allocation3 + $0x78] sm:$0xff] }
 0x47d   : > { %1606 = vst.msk [vmem:[#allocation3 + $0x58] sm:$0xff] %vm867_vm4, %v1592_v16  ;;  %v1553_v37 = vmul.f32 %v1524_v9, %v1496_v28  ;;  %v1565_v27 = vadd.f32 %v1551_v23, %v1524_v9  ;;  %1577 = vst.msk [vmem:[#allocation4 + $0x50] sm:$0xff] %vm867_vm4, %v1563_v10  ;;  %v1595_v14 = vmul.f32 %v1496_v28, %v1494_v5  ;;  %v1613_v6 = vld [vmem:[#allocation3 + $0x28] sm:$0xff]  ;;  %v3258_v38 = vld [vmem:[#allocation4 + $0x18] sm:$0xff] }
 0x47e   : > { %1607 = vst.msk [vmem:[#allocation3 + $0x60] sm:$0xff] %vm867_vm4, %v1593_v24  ;;  %v1661_v36 = vmul.f32 %v1612_v32, %v3201_v8  ;;  %v1554_v42 = vmul.f32 %v1525_v22, %v1497_v35  ;;  %v1566_v45 = vadd.f32 %v1552_v29, %v1525_v22  ;;  %1578 = vst.msk [vmem:[#allocation4 + $0x58] sm:$0xff] %vm867_vm4, %v1564_v30  ;;  %v1640_v48 = vld [vmem:[#allocation4 + $0x20] sm:$0xff] }
 0x47f   : > { %v1596_v46 = vmul.f32 %v1497_v35, %v1495_v21  ;;  %1608 = vst.msk [vmem:[#allocation3 + $0x68] sm:$0xff] %vm867_vm4, %v1594_v31  ;;  %v1614_v47 = vld [vmem:[#allocation3 + $0x30] sm:$0xff]  ;;  %v1662_v49 = vmul.f32 %v1613_v6, %v3205_v15  ;;  %v1567_v51 = vadd.f32 %v1553_v37, %v1539_v40  ;;  %1579 = vst.msk [vmem:[#allocation4 + $0x60] sm:$0xff] %vm867_vm4, %v1565_v27  ;;  %v1641_v20 = vld [vmem:[#allocation4 + $0x28] sm:$0xff]  ;;  %v3297_v40 = vpop.permute.xlu1 %1885 }
 0x480   : > { %1609 = vst.msk [vmem:[#allocation3 + $0x70] sm:$0xff] %vm867_vm4, %v1595_v14  ;;  %v1615_v43 = vld [vmem:[#allocation3 + $0x38] sm:$0xff]  ;;  %v1663_v56 = vmul.f32 %v3251_v33, %v1614_v47  ;;  %v1673_v52 = vadd.f32 %v1661_v36, %v1640_v48  ;;  %v1697_v55 = vmul.f32 %v1612_v32, %v3194_v0  ;;  %v1568_v62 = vadd.f32 %v1554_v42, %v1540_v50  ;;  %v1616_v7 = vld [vmem:[#allocation3 + $0x40] sm:$0xff] }
 0x481   : > { %1580 = vst.msk [vmem:[#allocation4 + $0x68] sm:$0xff] %vm867_vm4, %v1566_v45  ;;  %1610 = vst.msk [vmem:[#allocation3 + $0x78] sm:$0xff] %vm867_vm4, %v1596_v46  ;;  %v1642_v39 = vld [vmem:[#allocation4 + $0x30] sm:$0xff]  ;;  %v1664_v53 = vmul.f32 %v3258_v38, %v1615_v43  ;;  %v1674_v54 = vadd.f32 %v1662_v49, %v1641_v20  ;;  %v1698_v11 = vmul.f32 %v1613_v6, %v3197_v2  ;;  %v1643_v57 = vld [vmem:[#allocation4 + $0x38] sm:$0xff]  ;;  %v3302_v49 = vpop.permute.xlu0 %1889 }
 0x482   : > { %1581 = vst.msk [vmem:[#allocation4 + $0x70] sm:$0xff] %vm867_vm4, %v1567_v51  ;;  %v1617_v41 = vld [vmem:[#allocation3 + $0x48] sm:$0xff]  ;;  %v1665_v59 = vmul.f32 %v1640_v48, %v1616_v7  ;;  %v1675_v60 = vadd.f32 %v1663_v56, %v1642_v39  ;;  %1685 = vst.msk [vmem:[#allocation4 + $0x20] sm:$0xff] %vm867_vm4, %v1673_v52  ;;  %v1699_v61 = vmul.f32 %v3236_v17, %v1614_v47  ;;  %v1644_v3 = vld [vmem:[#allocation4 + $0x40] sm:$0xff] }
 0x483   : > { %v1700_v63 = vmul.f32 %v3244_v25, %v1615_v43  ;;  %1709 = vst.msk [vmem:[#allocation3 + $0x20] sm:$0xff] %vm867_vm4, %v1697_v55  ;;  %1582 = vst.msk [vmem:[#allocation4 + $0x78] sm:$0xff] %vm867_vm4, %v1568_v62  ;;  %v1618_v1 = vld [vmem:[#allocation3 + $0x50] sm:$0xff]  ;;  %v1666_v5 = vmul.f32 %v1641_v20, %v1617_v41  ;;  %v1676_v9 = vadd.f32 %v1664_v53, %v1643_v57  ;;  %v1645_v21 = vld [vmem:[#allocation4 + $0x48] sm:$0xff] }
 0x484   : > { %1686 = vst.msk [vmem:[#allocation4 + $0x28] sm:$0xff] %vm867_vm4, %v1674_v54  ;;  %v1701_v12 = vmul.f32 %v1616_v7, %v1612_v32  ;;  %v1702_v13 = vmul.f32 %v1617_v41, %v1613_v6  ;;  %1710 = vst.msk [vmem:[#allocation3 + $0x28] sm:$0xff] %vm867_vm4, %v1698_v11  ;;  %v1619_v16 = vld [vmem:[#allocation3 + $0x58] sm:$0xff]  ;;  %v1667_v22 = vmul.f32 %v1642_v39, %v1618_v1  ;;  %v1646_v29 = vld [vmem:[#allocation4 + $0x50] sm:$0xff] }
 0x485   : > { %v1677_v23 = vadd.f32 %v1665_v59, %v1644_v3  ;;  %1687 = vst.msk [vmem:[#allocation4 + $0x30] sm:$0xff] %vm867_vm4, %v1675_v60  ;;  %v1703_v10 = vmul.f32 %v1618_v1, %v1614_v47  ;;  %1711 = vst.msk [vmem:[#allocation3 + $0x30] sm:$0xff] %vm867_vm4, %v1699_v61  ;;  %v1845_v24 = vadd.f32 %v3247_v26, %v3251_v33  ;;  %v1620_v28 = vld [vmem:[#allocation3 + $0x60] sm:$0xff]  ;;  %v1647_v27 = vld [vmem:[#allocation4 + $0x58] sm:$0xff] }
 0x486   : > { %1712 = vst.msk [vmem:[#allocation3 + $0x38] sm:$0xff] %vm867_vm4, %v1700_v63  ;;  %v1668_v30 = vmul.f32 %v1643_v57, %v1619_v16  ;;  %v1678_v31 = vadd.f32 %v1666_v5, %v1645_v21  ;;  %1688 = vst.msk [vmem:[#allocation4 + $0x38] sm:$0xff] %vm867_vm4, %v1676_v9  ;;  %v1704_v32 = vmul.f32 %v1619_v16, %v1615_v43  ;;  %v1621_v37 = vld [vmem:[#allocation3 + $0x68] sm:$0xff]  ;;  %v1657_v45 = vld [vmem:[#allocation4 + $0x60] sm:$0xff]  ;;  %v1942_v5 = vrot.slane %v3238_v18, 4 }
 0x487   : > { %1713 = vst.msk [vmem:[#allocation3 + $0x40] sm:$0xff] %vm867_vm4, %v1701_v12  ;;  %1714 = vst.msk [vmem:[#allocation3 + $0x48] sm:$0xff] %vm867_vm4, %v1702_v13  ;;  %v1846_v35 = vadd.f32 %v3254_v34, %v3258_v38  ;;  %v1669_v14 = vmul.f32 %v1644_v3, %v1620_v28  ;;  %v1679_v6 = vadd.f32 %v1667_v22, %v1646_v29  ;;  %v1622_v42 = vld [vmem:[#allocation3 + $0x70] sm:$0xff] }
 0x488   : > { %1689 = vst.msk [vmem:[#allocation4 + $0x40] sm:$0xff] %vm867_vm4, %v1677_v23  ;;  %v1705_v26 = vmul.f32 %v1620_v28, %v1616_v7  ;;  %1715 = vst.msk [vmem:[#allocation3 + $0x50] sm:$0xff] %vm867_vm4, %v1703_v10  ;;  %v1925_v36 = vmul.f32 %v3232_v4, %v1845_v24  ;;  %v1670_v46 = vmul.f32 %v1645_v21, %v1621_v37  ;;  %v1623_v50 = vld [vmem:[#allocation3 + $0x78] sm:$0xff]  ;;  %v1658_v51 = vld [vmem:[#allocation4 + $0x68] sm:$0xff]  ;;  %v3321_v23 = vpop.permute.xlu1 %1893 }
 0x489   : > { %v1680_v47 = vadd.f32 %v1668_v30, %v1647_v27  ;;  %1690 = vst.msk [vmem:[#allocation4 + $0x48] sm:$0xff] %vm867_vm4, %v1678_v31  ;;  %v1706_v34 = vmul.f32 %v1621_v37, %v1617_v41  ;;  %1716 = vst.msk [vmem:[#allocation3 + $0x58] sm:$0xff] %vm867_vm4, %v1704_v32  ;;  %v1926_v48 = vmul.f32 %v3240_v19, %v1846_v35  ;;  %v1659_v56 = vld [vmem:[#allocation4 + $0x70] sm:$0xff]  ;;  %v1742_v7 = vld [vmem:[#allocation4 + $0x20] sm:$0xff]  ;;  %v3328_v35 = vpop.permute.xlu0 %1897 }
 0x48a   : > { %v1671_v43 = vmul.f32 %v1646_v29, %v1622_v42  ;;  %v1681_v20 = vadd.f32 %v1669_v14, %v1657_v45  ;;  %1691 = vst.msk [vmem:[#allocation4 + $0x50] sm:$0xff] %vm867_vm4, %v1679_v6  ;;  %v1707_v4 = vmul.f32 %v1622_v42, %v1618_v1  ;;  %1717 = vst.msk [vmem:[#allocation3 + $0x60] sm:$0xff] %vm867_vm4, %v1705_v26  ;;  %v1734_v19 = vld [vmem:[#allocation3 + $0x20] sm:$0xff]  ;;  %v1948_v39 = vsel %vm867_vm4, %v1925_v36, 0.0  ;;  %v1660_v53 = vld [vmem:[#allocation4 + $0x78] sm:$0xff] }
 0x48b   : > { %v1672_v52 = vmul.f32 %v1647_v27, %v1623_v50  ;;  %v1682_v55 = vadd.f32 %v1670_v46, %v1658_v51  ;;  %1692 = vst.msk [vmem:[#allocation4 + $0x58] sm:$0xff] %vm867_vm4, %v1680_v47  ;;  %v1708_v62 = vmul.f32 %v1623_v50, %v1619_v16  ;;  %1718 = vst.msk [vmem:[#allocation3 + $0x68] sm:$0xff] %vm867_vm4, %v1706_v34  ;;  %v1735_v11 = vld [vmem:[#allocation3 + $0x28] sm:$0xff]  ;;  %v1815_v57 = vmul.f32 0.0, %v1734_v19 }
 0x48c   : > { %v1683_v54 = vadd.f32 %v1671_v43, %v1659_v56  ;;  %1693 = vst.msk [vmem:[#allocation4 + $0x60] sm:$0xff] %vm867_vm4, %v1681_v20  ;;  %1719 = vst.msk [vmem:[#allocation3 + $0x70] sm:$0xff] %vm867_vm4, %v1707_v4  ;;  %v1743_v41 = vld [vmem:[#allocation4 + $0x28] sm:$0xff]  ;;  %v1949_v59 = vsel %vm867_vm4, %v1926_v48, 0.0  ;;  %v1736_v61 = vld [vmem:[#allocation3 + $0x30] sm:$0xff]  ;;  %v1816_v3 = vmul.f32 0.0, %v1735_v11 }
 0x48d   : > { %v1684_v60 = vadd.f32 %v1672_v52, %v1660_v53  ;;  %1694 = vst.msk [vmem:[#allocation4 + $0x68] sm:$0xff] %vm867_vm4, %v1682_v55  ;;  %1720 = vst.msk [vmem:[#allocation3 + $0x78] sm:$0xff] %vm867_vm4, %v1708_v62  ;;  %v3314_v63 = vld [vmem:[#allocation3 + $0x38] sm:$0xff]  ;;  %v1744_v1 = vld [vmem:[#allocation4 + $0x30] sm:$0xff]  ;;  %v1817_v13 = vmul.f32 0.0, %v1736_v61  ;;  %v1847_v21 = vadd.f32 %v1815_v57, %v1742_v7  ;;  %v3319_v22 = vadd.f32 %v1949_v59, %v1948_v39 }
 0x48e   : > { %1695 = vst.msk [vmem:[#allocation4 + $0x70] sm:$0xff] %vm867_vm4, %v1683_v54  ;;  %v1722_v9 = vld [vmem:[#allocation3 + $0x40] sm:$0xff]  ;;  %v1723_v12 = vld [vmem:[#allocation3 + $0x48] sm:$0xff]  ;;  %v1818_v16 = vmul.f32 0.0, %v3314_v63  ;;  %v1745_v24 = vld [vmem:[#allocation4 + $0x38] sm:$0xff]  ;;  %v1848_v26 = vadd.f32 %v1816_v3, %v1743_v41 }
 0x48f   : > { %1696 = vst.msk [vmem:[#allocation4 + $0x78] sm:$0xff] %vm867_vm4, %v1684_v60  ;;  %v1724_v10 = vld [vmem:[#allocation3 + $0x50] sm:$0xff]  ;;  %v1747_v28 = vld [vmem:[#allocation4 + $0x40] sm:$0xff]  ;;  %v1755_v29 = vmul.f32 %v1722_v9, %v3201_v8  ;;  %v1756_v30 = vmul.f32 %v1723_v12, %v3205_v15  ;;  %v1779_v31 = vmul.f32 %v1722_v9, %v3194_v0  ;;  %v1780_v32 = vmul.f32 %v1723_v12, %v3197_v2 }
 0x490   : > { %v1725_v37 = vld [vmem:[#allocation3 + $0x58] sm:$0xff]  ;;  %v1748_v27 = vld [vmem:[#allocation4 + $0x48] sm:$0xff]  ;;  %v1757_v14 = vmul.f32 %v1724_v10, %v3251_v33  ;;  %v1781_v6 = vmul.f32 %v1724_v10, %v3236_v17  ;;  %v1849_v36 = vadd.f32 %v1817_v13, %v1744_v1  ;;  %v1850_v17 = vadd.f32 %v1818_v16, %v1745_v24 }
 0x491   : > { %v1726_v42 = vld [vmem:[#allocation3 + $0x60] sm:$0xff]  ;;  %v1749_v45 = vld [vmem:[#allocation4 + $0x50] sm:$0xff]  ;;  %v1758_v8 = vmul.f32 %v1725_v37, %v3258_v38  ;;  %v1763_v46 = vadd.f32 %v1755_v29, %v1747_v28  ;;  %v1764_v15 = vadd.f32 %v1756_v30, %v1748_v27  ;;  %v1782_v0 = vmul.f32 %v1725_v37, %v3244_v25  ;;  %1787 = vst.msk [vmem:[#allocation3 + $0x40] sm:$0xff] %vm867_vm4, %v1779_v31 }
 0x492   : > { %1788 = vst.msk [vmem:[#allocation3 + $0x48] sm:$0xff] %vm867_vm4, %v1780_v32  ;;  %v1727_v2 = vld [vmem:[#allocation3 + $0x68] sm:$0xff]  ;;  %v1750_v47 = vld [vmem:[#allocation4 + $0x58] sm:$0xff]  ;;  %v1759_v34 = vmul.f32 %v1742_v7, %v1726_v42  ;;  %v1765_v33 = vadd.f32 %v1757_v14, %v1749_v45  ;;  %v1783_v48 = vmul.f32 %v1734_v19, %v1726_v42  ;;  %1789 = vst.msk [vmem:[#allocation3 + $0x50] sm:$0xff] %vm867_vm4, %v1781_v6  ;;  %v3344_v7 = vpop.permute.xlu1 %1901 }
 0x493   : > { %v1728_v50 = vld [vmem:[#allocation3 + $0x70] sm:$0xff]  ;;  %v1751_v51 = vld [vmem:[#allocation4 + $0x60] sm:$0xff]  ;;  %v1760_v43 = vmul.f32 %v1743_v41, %v1727_v2  ;;  %v1766_v38 = vadd.f32 %v1758_v8, %v1750_v47  ;;  %1771 = vst.msk [vmem:[#allocation4 + $0x40] sm:$0xff] %vm867_vm4, %v1763_v46  ;;  %1772 = vst.msk [vmem:[#allocation4 + $0x48] sm:$0xff] %vm867_vm4, %v1764_v15  ;;  %v1784_v25 = vmul.f32 %v1735_v11, %v1727_v2  ;;  %v1906_v11 = vpop.permute.xlu0 %1905 }
 0x494   : > { %1790 = vst.msk [vmem:[#allocation3 + $0x58] sm:$0xff] %vm867_vm4, %v1782_v0  ;;  %v1927_v20 = vmul.f32 %v3268_v58, %v1847_v21  ;;  %v1729_v4 = vld [vmem:[#allocation3 + $0x78] sm:$0xff]  ;;  %v1752_v56 = vld [vmem:[#allocation4 + $0x68] sm:$0xff]  ;;  %v1761_v52 = vmul.f32 %v1744_v1, %v1728_v50  ;;  %v1767_v55 = vadd.f32 %v1759_v34, %v1751_v51  ;;  %1773 = vst.msk [vmem:[#allocation4 + $0x50] sm:$0xff] %vm867_vm4, %v1765_v33 }
 0x495   : > { %v1785_v62 = vmul.f32 %v1736_v61, %v1728_v50  ;;  %1791 = vst.msk [vmem:[#allocation3 + $0x60] sm:$0xff] %vm867_vm4, %v1783_v48  ;;  %v1928_v19 = vmul.f32 %v3274_v44, %v1848_v26  ;;  %v1753_v39 = vld [vmem:[#allocation4 + $0x70] sm:$0xff]  ;;  %v1762_v53 = vmul.f32 %v1745_v24, %v1729_v4  ;;  %v1768_v54 = vadd.f32 %v1760_v43, %v1752_v56 }
 0x496   : > { %1774 = vst.msk [vmem:[#allocation4 + $0x58] sm:$0xff] %vm867_vm4, %v1766_v38  ;;  %v1786_v58 = vmul.f32 %v3314_v63, %v1729_v4  ;;  %1792 = vst.msk [vmem:[#allocation3 + $0x68] sm:$0xff] %vm867_vm4, %v1784_v25  ;;  %v1754_v41 = vld [vmem:[#allocation4 + $0x78] sm:$0xff]  ;;  %v1769_v57 = vadd.f32 %v1761_v52, %v1753_v39  ;;  %v1951_v44 = vrot.slane %v3319_v22, 4  ;;  %v1929_v59 = vmul.f32 %v3297_v40, %v1849_v36 }
 0x497   : > { %1775 = vst.msk [vmem:[#allocation4 + $0x60] sm:$0xff] %vm867_vm4, %v1767_v55  ;;  %1793 = vst.msk [vmem:[#allocation3 + $0x70] sm:$0xff] %vm867_vm4, %v1785_v62  ;;  %v1930_v60 = vmul.f32 %v3302_v49, %v1850_v17  ;;  %v1770_v61 = vadd.f32 %v1762_v53, %v1754_v41  ;;  %v1943_v63 = vadd.f32 %v1942_v5, %v3238_v18  ;;  %v1957_v1 = vsel %vm867_vm4, %v1927_v20, 0.0  ;;  %v1914_v42 = vpop.permute.xlu0 %1913 }
 0x498   : > { %1776 = vst.msk [vmem:[#allocation4 + $0x68] sm:$0xff] %vm867_vm4, %v1768_v54  ;;  %1794 = vst.msk [vmem:[#allocation3 + $0x78] sm:$0xff] %vm867_vm4, %v1786_v58  ;;  %v1958_v3 = vsel %vm867_vm4, %v1928_v19, 0.0  ;;  %v1952_v9 = vadd.f32 %v1951_v44, %v3319_v22  ;;  %v1803_v40 = vld [vmem:[#allocation3 + $0x40] sm:$0xff]  ;;  %v1966_v13 = vsel %vm867_vm4, %v1929_v59, 0.0  ;;  %v1910_v22 = vpop.permute.xlu1 %1909 }
 0x499   : > { %1777 = vst.msk [vmem:[#allocation4 + $0x70] sm:$0xff] %vm867_vm4, %v1769_v57  ;;  %v1804_v12 = vld [vmem:[#allocation3 + $0x48] sm:$0xff]  ;;  %v1959_v49 = vadd.f32 %v1958_v3, %v1957_v1  ;;  %v1967_v16 = vsel %vm867_vm4, %v1930_v60, 0.0  ;;  %1778 = vst.msk [vmem:[#allocation4 + $0x78] sm:$0xff] %vm867_vm4, %v1770_v61  ;;  %v1805_v21 = vld [vmem:[#allocation3 + $0x50] sm:$0xff]  ;;  %v1819_v10 = vmul.f32 0.0, %v1803_v40 }
 0x49a   : > { %v1820_v18 = vmul.f32 0.0, %v1804_v12  ;;  %v1968_v5 = vadd.f32 %v1967_v16, %v1966_v13  ;;  %v1821_v28 = vmul.f32 0.0, %v1805_v21  ;;  %v1835_v29 = vld [vmem:[#allocation4 + $0x40] sm:$0xff]  ;;  %v1836_v30 = vld [vmem:[#allocation4 + $0x48] sm:$0xff]  ;;  %v1953_v31 = vrot.slane %v1952_v9, 2 }
 0x49b   : > { %v1806_v24 = vld [vmem:[#allocation3 + $0x58] sm:$0xff]  ;;  %v1960_v32 = vrot.slane %v1959_v49, 4  ;;  %v1944_v37 = vrot.slane %v1943_v63, 2  ;;  %v1837_v6 = vld [vmem:[#allocation4 + $0x50] sm:$0xff]  ;;  %v1851_v26 = vadd.f32 %v1835_v29, %v1819_v10  ;;  %v1922_v61 = vpop.permute.xlu0 %1921 }
 0x49c   : > { %v1807_v27 = vld [vmem:[#allocation3 + $0x60] sm:$0xff]  ;;  %v1822_v14 = vmul.f32 0.0, %v1806_v24  ;;  %v1852_v36 = vadd.f32 %v1836_v30, %v1820_v18  ;;  %v1853_v15 = vadd.f32 %v1837_v6, %v1821_v28  ;;  %v1969_v2 = vrot.slane %v1968_v5, 4 }
 0x49d   : > { %v1808_v45 = vld [vmem:[#allocation3 + $0x68] sm:$0xff]  ;;  %v1823_v8 = vmul.f32 0.0, %v1807_v27  ;;  %v1838_v46 = vld [vmem:[#allocation4 + $0x58] sm:$0xff]  ;;  %v1961_v0 = vadd.f32 %v1960_v32, %v1959_v49  ;;  %v1931_v17 = vmul.f32 %v3321_v23, %v1851_v26  ;;  %v1954_v50 = vadd.f32 %v1953_v31, %v1952_v9  ;;  %v1918_v23 = vpop.permute.xlu1 %1917 }
 0x49e   : > { %v1809_v47 = vld [vmem:[#allocation3 + $0x70] sm:$0xff]  ;;  %v1824_v34 = vmul.f32 0.0, %v1808_v45  ;;  %v1839_v33 = vld [vmem:[#allocation4 + $0x60] sm:$0xff]  ;;  %v1854_v48 = vadd.f32 %v1838_v46, %v1822_v14  ;;  %v1932_v20 = vmul.f32 %v3328_v35, %v1852_v36  ;;  %v1933_v4 = vmul.f32 %v3344_v7, %v1853_v15 }
 0x49f   : > { %v1810_v51 = vld [vmem:[#allocation3 + $0x78] sm:$0xff]  ;;  %v1825_v43 = vmul.f32 0.0, %v1809_v47  ;;  %v1840_v38 = vld [vmem:[#allocation4 + $0x68] sm:$0xff]  ;;  %v1855_v25 = vadd.f32 %v1839_v33, %v1823_v8  ;;  %v1962_v19 = vrot.slane %v1961_v0, 2  ;;  %v1945_v39 = vadd.f32 %v1944_v37, %v1943_v63 }
 0x4a0   : > { %v1826_v56 = vmul.f32 0.0, %v1810_v51  ;;  %v1841_v52 = vld [vmem:[#allocation4 + $0x70] sm:$0xff]  ;;  %v1856_v55 = vadd.f32 %v1840_v38, %v1824_v34  ;;  %v1934_v62 = vmul.f32 %v1906_v11, %v1854_v48  ;;  %v1842_v53 = vld [vmem:[#allocation4 + $0x78] sm:$0xff]  ;;  %v1970_v41 = vadd.f32 %v1969_v2, %v1968_v5 }
 0x4a1   : > { %v1857_v54 = vadd.f32 %v1841_v52, %v1825_v43  ;;  %v1935_v58 = vmul.f32 %v1910_v22, %v1855_v25  ;;  %v1963_v59 = vadd.f32 %v1962_v19, %v1961_v0  ;;  %v1975_v60 = vsel %vm867_vm4, %v1931_v17, 0.0 }
 0x4a2   : > { %v1858_v57 = vadd.f32 %v1842_v53, %v1826_v56  ;;  %v1936_v44 = vmul.f32 %v1914_v42, %v1856_v55  ;;  %v1971_v1 = vrot.slane %v1970_v41, 2  ;;  %v1976_v7 = vsel %vm867_vm4, %v1932_v20, 0.0  ;;  %v2045_v53 = vpop.permute.xlu1 %2044 }
 0x4a3   : > { %v1937_v35 = vmul.f32 %v1918_v23, %v1857_v54  ;;  %v1984_v3 = vsel %vm867_vm4, %v1933_v4, 0.0  ;;  %v1955_v9 = vrot.slane %v1954_v50, 1  ;;  %v1977_v63 = vadd.f32 %v1976_v7, %v1975_v60 }
 0x4a4   : > { %v1938_v11 = vmul.f32 %v1922_v61, %v1858_v57  ;;  %v1985_v40 = vsel %vm867_vm4, %v1934_v62, 0.0  ;;  %v1972_v12 = vadd.f32 %v1971_v1, %v1970_v41  ;;  %v1993_v13 = vsel %vm867_vm4, %v1935_v58, 0.0  ;;  %v2416_v41 = vld [vmem:[%s740_s17] ss:$0 sm:$0xff] }
 0x4a5   : > { %v1986_v49 = vadd.f32 %v1985_v40, %v1984_v3  ;;  %v1994_v16 = vsel %vm867_vm4, %v1936_v44, 0.0  ;;  %v1964_v21 = vrot.slane %v1963_v59, 1  ;;  %v1978_v10 = vrot.slane %v1977_v63, 4 }
 0x4a6   : > { %v1995_v18 = vadd.f32 %v1994_v16, %v1993_v13  ;;  %v2002_v5 = vsel %vm867_vm4, %v1937_v35, 0.0  ;;  %v1946_v24 = vrot.slane %v1945_v39, 1  ;;  %v2003_v29 = vsel %vm867_vm4, %v1938_v11, 0.0  ;;  %v2419_v16 = vld [vmem:[%s3530_s27] ss:$0 sm:$0xff] }
 0x4a7   : > { %v1987_v28 = vrot.slane %v1986_v49, 4  ;;  %v1979_v30 = vadd.f32 %v1978_v10, %v1977_v63  ;;  %v2004_v32 = vadd.f32 %v2003_v29, %v2002_v5  ;;  %v1956_v22 = vadd.f32 %v1955_v9, %v1954_v50 }
 0x4a8   : > { %v1996_v31 = vrot.slane %v1995_v18, 4  ;;  %v1973_v37 = vrot.slane %v1972_v12, 1  ;;  %v1965_v14 = vadd.f32 %v1964_v21, %v1963_v59  ;;  %v1947_v42 = vadd.f32 %v1946_v24, %v1945_v39  ;;  %v2661_v59 = vld [vmem:[%s2993_s20] sm:$0xff] }
 0x4a9   : > { %v1988_v27 = vadd.f32 %v1987_v28, %v1986_v49  ;;  %v1980_v6 = vrot.slane %v1979_v30, 2  ;;  %v2005_v36 = vrot.slane %v2004_v32, 4  ;;  %v2418_v49 = vld [vmem:[%s3529_s13] ss:$0 sm:$0xff] }
 0x4aa   : > { %v1997_v26 = vadd.f32 %v1996_v31, %v1995_v18  ;;  %v1974_v0 = vadd.f32 %v1973_v37, %v1972_v12  ;;  %v2020_v47 = vsel %vm2019_vm8, %v1956_v22, %v1947_v42 }
 0x4ab   : > { %v1989_v45 = vrot.slane %v1988_v27, 2  ;;  %v1981_v8 = vadd.f32 %v1980_v6, %v1979_v30  ;;  %v2006_v15 = vadd.f32 %v2005_v36, %v2004_v32  ;;  %v2022_v17 = vsel %vm2021_vm9, %v1965_v14, %v2020_v47 }
 0x4ac   : > { %v1998_v46 = vrot.slane %v1997_v26, 2  ;;  %v2024_v20 = vsel %vm2023_vm10, %v1974_v0, %v2022_v17 }
 0x4ad   : > { %v1990_v2 = vadd.f32 %v1989_v45, %v1988_v27  ;;  %v1982_v34 = vrot.slane %v1981_v8, 1  ;;  %v2007_v48 = vrot.slane %v2006_v15, 2 }
 0x4ae   : > { %v1999_v33 = vadd.f32 %v1998_v46, %v1997_v26 }
 0x4af   : > { %v1991_v50 = vrot.slane %v1990_v2, 1  ;;  %v1983_v51 = vadd.f32 %v1982_v34, %v1981_v8  ;;  %v2008_v38 = vadd.f32 %v2007_v48, %v2006_v15 }
 0x4b0   : > { %v2000_v43 = vrot.slane %v1999_v33, 1 }
 0x4b1   : > { %v1992_v25 = vadd.f32 %v1991_v50, %v1990_v2  ;;  %v2009_v56 = vrot.slane %v2008_v38, 1  ;;  %v2026_v52 = vsel %vm2025_vm11, %v1983_v51, %v2024_v20 }
 0x4b2   : > { %v2001_v4 = vadd.f32 %v2000_v43, %v1999_v33 }
 0x4b3   : > { %v2028_v55 = vsel %vm2027_vm12, %v1992_v25, %v2026_v52  ;;  %v2010_v62 = vadd.f32 %v2009_v56, %v2008_v38 }
 0x4b4   : > { %v2030_v19 = vsel %vm2029_vm13, %v2001_v4, %v2028_v55 }
 0x4b5   : > { %v2032_v39 = vsel %vm2031_vm14, %v2010_v62, %v2030_v19 }
 0x4b6   : > { %2034 = vst.msk [vmem:[#allocation5] sm:$0xff] %vm867_vm4, %v2032_v39 }
 0x4bd   : > { %v2035_v54 = vld [vmem:[#allocation5] sm:$0xff] }
 0x4be   : > { %v2047_v58 = vmul.f32 %v2045_v53, %v2035_v54 }
 0x4c0   : > { %2505 = vmatmul.mubr.msk.f32.vlgmr.msra.gmra.mrb[2].mxu0 %vm867_vm4, %v2047_v58 }
 0x593   : > { %v2132_v23 = vpop.f32.mrb[2].mxu0 }
 0x594   : > { %v2133_v57 = vadd.f32 %v2416_v41, %v2132_v23  ;;  %v2506_v44 = vpop.f32.mrb[3].mxu0 }
 0x596   : > { %v2136_v60 = vadd.f32 %v2661_v59, %v2133_v57 }
 0x598   : > { %v2139_v61 = vsel %vm751_vm1, %v2136_v60, 0.0 }
 0x599   : > { %2140 = vadd.xlane.f32.xlu0 %v2139_v61 }
 0x626   : > { %v2141_v35 = vpop.xlane.xlu0 %2140 }
 0x627   : > { %v2142_v1 = vmul.f32 0.03125, %v2141_v35 }
 0x629   : > { %v2143_v7 = vsub.f32 %v2136_v60, %v2142_v1 }
 0x62b   : > { %v2144_v3 = vmul.f32 %v2143_v7, %v2143_v7 }
 0x62d   : > { %v2145_v11 = vsel %vm751_vm1, %v2144_v3, 0.0 }
 0x62e   : > { %2146 = vadd.xlane.f32.xlu1 %v2145_v11 }
 0x6bb   : > { %v2147_v9 = vpop.xlane.xlu1 %2146 }
 0x6bc   : > { %v2148_v63 = vmul.f32 0.03125, %v2147_v9 }
 0x6be   : > { %v2149_v40 = vadd.f32 1e-05, %v2148_v63 }
 0x6c0   : > { %2659 = vrsqrt.f32 %v2149_v40 }
 0x6ca   : > { %v2660_v12 = vpop.eup %2659 }
 0x6cb   : > { %v2151_v13 = vmul.f32 %v2660_v12, %v2143_v7 }
 0x6cd   : > { %v2158_v21 = vmul.f32 %v2418_v49, %v2151_v13 }
 0x6cf   : > { %v2165_v10 = vadd.f32 %v2419_v16, %v2158_v21 }
 0x6d1   : > { %2166 = vst.msk [vmem:[%s2993_s20] sm:$0xff] %vm751_vm1, %v2165_v10 }
 0x6d2   : > { %2675 = shalt.err (!%p2672_p8)
}
 0x6d3   : > { %s2676_s20 = scalar_lea.hbm %s3398_s3, 128  ;;  %s2680_s19 = scalar_lea.hbm %s3531_s18, 256 }
 0x6d4   : > { %p2677_p10 = scmp.ne.s32.totalorder %s3398_s3, %s2676_s20  ;;  %p2681_p13 = scmp.lt.u32.totalorder %s3398_s3, %s3531_s18 }
 0x6d5   : > { %p2682_p0 = scmp.lt.u32.totalorder %s2680_s19, %s2676_s20  ;;  %p2684_p2 = scmp.lt.u32.totalorder %s2676_s20, %s3398_s3 }
 0x6d6   : > { %p2678_p11 = pnand %p2677_p10, %p2898_p3 }
 0x6d7   : > { %p2683_p1 = por %p2682_p0, %p2681_p13 }
 0x6d8   : > { %p2679_p12 = pneg %p2678_p11 }
 0x6d9   : > { %p2685_p4 = por %p2684_p2, %p2683_p1 }
 0x6db   : > { %p2686_p5 = pnand %p2685_p4, %p2679_p12 }
 0x6dd   : > { %2689 = shalt.err (!%p2686_p5)
}
 0x6de   : > { %2537 = dma.vmem_to_hbm [thread:$0]  (%p2898_p3), %s3400_s0, 128, %s3398_s3, %s2168_s23  }
 0x6df PF: > { %s3533_s13 = sld [smem:[#allocation16_spill]]  ;;  %s3534_s21 = sld [smem:[#allocation9_spill]] }
 0x6e5   : > { %p2543_p6 = scmp.ge.s32.totalorder %s3533_s13, 2  ;;  %s2193_s27 = sand.u32 1, %s3534_s21  }
 0x6e6   : > { %s2194_s22 = scalar_lea.sflag [#allocation7], %s2193_s27 }
 0x6e7   : > { %p2540_p7 = pnand %p2543_p6, %p2908_p9 }
 0x6e9   : > { %2723 = dma.done.wait (!%p2540_p7), %s2194_s22, 128  }
 0x6ea   : > { %2725 = vsyncadd (!%p2540_p7), %s2194_s22, 4294967168  ;;  %s29_s28 = sadd.s32 1, %s3533_s13   ;;  %s3536_s21 = sld [smem:[#allocation10_spill]] }
 0x6eb   : > { %p26_p8 = scmp.ge.s32.totalorder %s29_s28, 6   ;;  %s3537_s22 = sld [smem:[#allocation11_spill]] }
 0x6ec   : > { %s3538_s23 = sld [smem:[#allocation21_spill]]  ;;  %s3539_s24 = sld [smem:[#allocation14_spill]] }
 0x6ed   : > { %s3540_s25 = sld [smem:[#allocation15_spill]]  ;;  %s3541_s26 = sld [smem:[#allocation17_spill]] }
 0x6ee   : > { %s3542_s27 = sld [smem:[#allocation19_spill]]  ;;  %28 = sbr.rel (!%p26_p8) target bundleno = 15 (0xf), region = 168 }
 0x6f5   :  { %2199 = vsyncpa [#allocation7], 1 }
 0x6f6   :  { %2201 = vsyncpa [#allocation7 + $0x1], 1 }

</bundles_post_ra>
